<compile_context>
chip_gen: v6e
topology: v6e:2x2x1
jax: 0.10.0
libtpu: 0.0.40
codegen_flags: <defaults>
</compile_context>

<pallas_src>
import functools

import jax
import jax.numpy as jnp
from jax import lax
from jax.experimental import pallas as pl
from jax.experimental.pallas import tpu as pltpu

LN_EPS = 1e-5


def _gcu_kernel(num_heads, head_dim, num_slabs, seq, mm_dtype,
                z_ref, d_ref, mask_ref, wd_ref, gamma_ref, beta_ref,
                w_ref, bg_ref, wf_ref, bf_ref,
                out_ref,
                proj_ref, merged_ref, dbias_ref, mcol_ref):
    H, C, I, N = num_heads, head_dim, num_slabs, seq
    IN = I * N

    # ---- LayerNorm over the feature dim, all I*N rows at once (f32). ----
    x = z_ref[...].astype(jnp.float32)                       # [IN, D]
    mu = jnp.mean(x, axis=-1, keepdims=True)
    xc = x - mu
    var = jnp.mean(xc * xc, axis=-1, keepdims=True)
    xn = xc * lax.rsqrt(var + LN_EPS) * gamma_ref[...] + beta_ref[...]
    xn_mm = xn.astype(mm_dtype)                               # [IN, D], tiny, stays live

    # ---- Projection: 4*H small dots parked in VMEM scratch [4H, IN, C]. ----
    # Weight is packed head-major as [q_0..q_{H-1} | k_* | v_* | g_*] along the
    # leading axis; the num_heads**-0.5 scale is folded into the q blocks.
    @pl.loop(0, 4 * H)
    def _project(j):
        proj_ref[j] = jnp.dot(
            xn_mm, w_ref[j],
            preferred_element_type=jnp.float32).astype(proj_ref.dtype)

    # ---- Per-head distance bias, hoisted once per grid step into scratch. ----
    dmat = d_ref[...]                                         # [N, N] (rows=q, cols=k)
    for h in range(H):
        dbias_ref[h] = dmat * wd_ref[h]                       # scalar from SMEM

    qidx = lax.broadcasted_iota(jnp.int32, (N, N), 0)
    kidx = lax.broadcasted_iota(jnp.int32, (N, N), 1)

    # ---- Slab-outer loop, all heads batched per slab. ----
    @pl.loop(0, I)
    def _slab(i):
        r0 = pl.multiple_of(i * N, N)
        rows = pl.ds(r0, N)

        mrow = mask_ref[pl.ds(i, 1), :]                       # [1, N] key mask
        kbias = 1e9 * (mrow - 1.0)                            # [1, N]

        q = proj_ref[0 * H:1 * H, rows, :]                    # [H, N, C]
        k = proj_ref[1 * H:2 * H, rows, :]                    # [H, N, C]
        v = proj_ref[2 * H:3 * H, rows, :]                    # [H, N, C]
        g = jax.nn.sigmoid(
            proj_ref[3 * H:4 * H, rows, :].astype(jnp.float32) + bg_ref[...])

        # All-head logits with one batched dot_general.
        logits = jnp.einsum('hqc,hkc->hqk', q, k,
                            preferred_element_type=jnp.float32)   # [H, N, N]
        # NOTE: the module's b-term (linear_b) is constant along the key axis
        # and therefore cancels inside the softmax; it is omitted here.
        logits = logits + dbias_ref[...] + kbias

        m = jnp.max(logits, axis=-1, keepdims=True)
        e = jnp.exp(logits - m)
        w = e * pl.reciprocal(jnp.sum(e, axis=-1, keepdims=True), approx=True)

        o = jnp.einsum('hqk,hkc->hqc', w.astype(mm_dtype), v,
                       preferred_element_type=jnp.float32)        # [H, N, C]
        merged_ref[:, rows, :] = (g * o).astype(merged_ref.dtype)

        # Query-row mask as a column (select + lane-reduce; avoids a second
        # mask DMA and any unaligned lane->sublane reshape).
        mcol_ref[rows, :] = jnp.sum(
            jnp.where(qidx == kidx, mrow, 0.0), axis=-1, keepdims=True)

    # ---- Final linear over all I*N rows (per-head accumulated), row mask. ----
    acc = jnp.zeros((IN, out_ref.shape[-1]), jnp.float32)
    for h in range(H):
        acc = acc + jnp.dot(merged_ref[h], wf_ref[h],
                            preferred_element_type=jnp.float32)
    out = acc + bf_ref[...]
    out_ref[...] = (out * mcol_ref[...]).astype(out_ref.dtype)


def geometry_constraint_update(z_ij, d_jk_, mask_z, params, *, num_heads,
                               head_dim, matmul_dtype=jnp.bfloat16):
    B, I, N, D = z_ij.shape
    H, C = num_heads, head_dim
    IN = I * N
    f32 = jnp.float32
    mm = matmul_dtype

    z2 = z_ij.reshape(B, IN, D).astype(mm)                    # all I slabs fused per batch
    d2 = d_jk_[..., 0].astype(f32)                            # [B, N, N]
    mrow = mask_z.astype(f32)                                 # [B, I, N] (single mask input)

    # Head-major fused projection weight [4H, D, C]: q blocks carry the scale.
    scale = float(H) ** -0.5

    def to_hdc(w):                                            # [D, H*C] -> [H, D, C]
        return jnp.transpose(w.reshape(D, H, C), (1, 0, 2))

    w_all = jnp.concatenate(
        [to_hdc(params["wq"]) * scale, to_hdc(params["wk"]),
         to_hdc(params["wv"]), to_hdc(params["wg"])], axis=0).astype(mm)   # [4H, D, C]
    bg3 = params["bg"].reshape(H, 1, C).astype(f32)           # [H, 1, C]
    wf3 = params["wf"].reshape(H, C, D).astype(mm)            # [H, C, D]
    bf = params["bf"].astype(f32)                             # [1, D]
    gamma = params["gamma"].astype(f32)                       # [1, D]
    beta = params["beta"].astype(f32)                         # [1, D]
    wd = params["wd"].reshape(H).astype(f32)                  # [H] -> SMEM scalars

    kernel = functools.partial(_gcu_kernel, H, C, I, N, mm)
    rep2 = lambda b: (0, 0)
    rep3 = lambda b: (0, 0, 0)

    out = pl.pallas_call(
        kernel,
        out_shape=jax.ShapeDtypeStruct((B, IN, D), f32),
        grid=(B,),
        in_specs=[
            pl.BlockSpec((None, IN, D), lambda b: (b, 0, 0)),    # z (all I slabs)
            pl.BlockSpec((None, N, N), lambda b: (b, 0, 0)),     # d (once per batch)
            pl.BlockSpec((None, I, N), lambda b: (b, 0, 0)),     # mask (single copy)
            pl.BlockSpec(memory_space=pltpu.MemorySpace.SMEM),   # w_d scalars
            pl.BlockSpec((1, D), rep2),                          # gamma
            pl.BlockSpec((1, D), rep2),                          # beta
            pl.BlockSpec((4 * H, D, C), rep3),                   # fused W (q,k,v,g)
            pl.BlockSpec((H, 1, C), rep3),                       # b_g
            pl.BlockSpec((H, C, D), rep3),                       # W_f
            pl.BlockSpec((1, D), rep2),                          # b_f
        ],
        out_specs=pl.BlockSpec((None, IN, D), lambda b: (b, 0, 0)),
        scratch_shapes=[
            pltpu.VMEM((4 * H, IN, C), mm),                      # parked projection
            pltpu.VMEM((H, IN, C), mm),                          # gated head outputs
            pltpu.VMEM((H, N, N), f32),                          # per-head d bias
            pltpu.VMEM((IN, 1), f32),                            # output row mask
        ],
        compiler_params=pltpu.CompilerParams(
            dimension_semantics=("parallel",)),
    )(z2, d2, mrow, wd, gamma, beta, w_all, bg3, wf3, bf)

    return out.reshape(B, I, N, D)


def _reference(z, d_jk, mask, p, *, num_heads, head_dim):
    B, I, N, D = z.shape
    H, C = num_heads, head_dim
    mu = jnp.mean(z, -1, keepdims=True)
    var = jnp.mean((z - mu) ** 2, -1, keepdims=True)
    xn = (z - mu) / jnp.sqrt(var + LN_EPS) * p["gamma"][0] + p["beta"][0]
    q = (xn @ p["wq"]).reshape(B, I, N, H, C) * H ** -0.5
    k = (xn @ p["wk"]).reshape(B, I, N, H, C)
    v = (xn @ p["wv"]).reshape(B, I, N, H, C)
    b = xn @ p["wb"]                                          # [B,I,N,H] (softmax-dead)
    d = d_jk[..., 0][..., None] * p["wd"][0]                  # [B,N,N,H]
    logits = jnp.einsum("biqhc,bikhc->bihqk", q, k)
    logits = logits + jnp.transpose(b, (0, 1, 3, 2))[..., None]
    logits = logits + jnp.transpose(d, (0, 3, 1, 2))[:, None]
    logits = logits + 1e9 * (mask[:, :, None, None, :] - 1.0)
    w = jax.nn.softmax(logits, axis=-1)
    wa = jnp.einsum("bihqk,bikhc->biqhc", w, v)
    g = jax.nn.sigmoid(xn @ p["wg"] + p["bg"][0]).reshape(B, I, N, H, C)
    out = (g * wa).reshape(B, I, N, H * C)
    out = out @ p["wf"] + p["bf"][0]
    return out * mask[..., None]


if __name__ == "__main__":
    B, I, N, D = 2, 3, 16, 32        # batch, outer index, seq, inp_dim
    H, C = 8, 32                     # num_heads, att_head_size (module defaults)
    HC = H * C

    key = jax.random.PRNGKey(0)
    ks = jax.random.split(key, 16)

    z_ij = jax.random.normal(ks[0], (B, I, N, D), jnp.float32)
    d_jk_ = jax.random.normal(ks[1], (B, N, N, 1), jnp.float32)
    mask_z = (jax.random.uniform(ks[2], (B, I, N)) > 0.2).astype(jnp.float32)

    s = 0.1
    params = {
        "gamma": 1.0 + s * jax.random.normal(ks[3], (1, D), jnp.float32),
        "beta": s * jax.random.normal(ks[4], (1, D), jnp.float32),
        "wq": s * jax.random.normal(ks[5], (D, HC), jnp.float32),
        "wk": s * jax.random.normal(ks[6], (D, HC), jnp.float32),
        "wv": s * jax.random.normal(ks[7], (D, HC), jnp.float32),
        "wb": s * jax.random.normal(ks[8], (D, H), jnp.float32),
        "wd": s * jax.random.normal(ks[9], (1, H), jnp.float32),
        "wg": s * jax.random.normal(ks[10], (D, HC), jnp.float32),
        "bg": s * jax.random.normal(ks[11], (1, HC), jnp.float32),
        "wf": s * jax.random.normal(ks[12], (HC, D), jnp.float32),
        "bf": s * jax.random.normal(ks[13], (1, D), jnp.float32),
    }

    ref = _reference(z_ij, d_jk_, mask_z, params, num_heads=H, head_dim=C)

    # Full-precision path: exact forward semantics.
    out_f32 = geometry_constraint_update(z_ij, d_jk_, mask_z, params,
                                         num_heads=H, head_dim=C,
                                         matmul_dtype=jnp.float32)
    out_f32 = jax.block_until_ready(out_f32)
    err_f32 = float(jnp.max(jnp.abs(out_f32 - ref)))
    assert err_f32 < 2e-3, f"f32 kernel mismatch vs reference: {err_f32}"

    # Default fast path: bf16 matmul operands, f32 accumulation.
    out_bf16 = geometry_constraint_update(z_ij, d_jk_, mask_z, params,
                                          num_heads=H, head_dim=C,
                                          matmul_dtype=jnp.bfloat16)
    out_bf16 = jax.block_until_ready(out_bf16)
    err_bf16 = float(jnp.max(jnp.abs(out_bf16 - ref)))
    assert err_bf16 < 5e-2, f"bf16 kernel mismatch vs reference: {err_bf16}"

    print("KERNEL_OK")
</pallas_src>

<mosaic_0001>
module attributes {stable_mosaic.version = 11 : i64} {
  func.func @_gcu_kernel(%arg0: i32, %arg1: memref<1x48x32xf32, #tpu.memory_space<vmem>>, %arg2: memref<1x16x16xf32, #tpu.memory_space<vmem>>, %arg3: memref<1x3x16xf32, #tpu.memory_space<vmem>>, %arg4: memref<8xf32, #tpu.memory_space<smem>>, %arg5: memref<1x32xf32, #tpu.memory_space<vmem>>, %arg6: memref<1x32xf32, #tpu.memory_space<vmem>>, %arg7: memref<32x32x32xf32, #tpu.memory_space<vmem>>, %arg8: memref<8x1x32xf32, #tpu.memory_space<vmem>>, %arg9: memref<8x32x32xf32, #tpu.memory_space<vmem>>, %arg10: memref<1x32xf32, #tpu.memory_space<vmem>>, %arg11: memref<1x48x32xf32, #tpu.memory_space<vmem>>, %arg12: memref<32x48x32xf32, #tpu.memory_space<vmem>>, %arg13: memref<8x48x32xf32, #tpu.memory_space<vmem>>, %arg14: memref<8x16x16xf32, #tpu.memory_space<vmem>>, %arg15: memref<48x1xf32, #tpu.memory_space<vmem>>) attributes {dimension_semantics = [#tpu.dimension_semantics<parallel>], iteration_bounds = array<i64: 2>, scalar_prefetch = 0 : i64, scratch_operands = 4 : i64, tpu.core_type = #tpu.core_type<tc>, window_params = [{transform_indices = @transform_0, window_bounds = array<i64: 1, 48, 32>}, {transform_indices = @transform_1, window_bounds = array<i64: 1, 16, 16>}, {transform_indices = @transform_2, window_bounds = array<i64: 1, 3, 16>}, {transform_indices = @transform_3, window_bounds = array<i64: 8>}, {pipeline_mode = #tpu.pipeline_mode<synchronous>, transform_indices = @transform_4, window_bounds = array<i64: 1, 32>}, {pipeline_mode = #tpu.pipeline_mode<synchronous>, transform_indices = @transform_5, window_bounds = array<i64: 1, 32>}, {pipeline_mode = #tpu.pipeline_mode<synchronous>, transform_indices = @transform_6, window_bounds = array<i64: 32, 32, 32>}, {pipeline_mode = #tpu.pipeline_mode<synchronous>, transform_indices = @transform_7, window_bounds = array<i64: 8, 1, 32>}, {pipeline_mode = #tpu.pipeline_mode<synchronous>, transform_indices = @transform_8, window_bounds = array<i64: 8, 32, 32>}, {pipeline_mode = #tpu.pipeline_mode<synchronous>, transform_indices = @transform_9, window_bounds = array<i64: 1, 32>}, {transform_indices = @transform_10, window_bounds = array<i64: 1, 48, 32>}]} {
    %c0 = arith.constant 0 : index
    %c0_0 = arith.constant 0 : index
    %c0_1 = arith.constant 0 : index
    %0 = vector.load %arg1[%c0, %c0_0, %c0_1] : memref<1x48x32xf32, #tpu.memory_space<vmem>>, vector<1x48x32xf32>
    %1 = vector.shape_cast %0 : vector<1x48x32xf32> to vector<48x32xf32>
    %cst = arith.constant dense<0.000000e+00> : vector<48xf32>
    %2 = vector.multi_reduction <add>, %1, %cst [1] : vector<48x32xf32> to vector<48xf32>
    %3 = vector.shape_cast %2 : vector<48xf32> to vector<48x1xf32>
    %cst_2 = arith.constant 3.200000e+01 : f32
    %4 = vector.broadcast %cst_2 : f32 to vector<48x1xf32>
    %5 = arith.divf %3, %4 : vector<48x1xf32>
    %6 = vector.broadcast %5 : vector<48x1xf32> to vector<48x32xf32>
    %7 = arith.subf %1, %6 : vector<48x32xf32>
    %8 = arith.mulf %7, %7 : vector<48x32xf32>
    %cst_3 = arith.constant dense<0.000000e+00> : vector<48xf32>
    %9 = vector.multi_reduction <add>, %8, %cst_3 [1] : vector<48x32xf32> to vector<48xf32>
    %10 = vector.shape_cast %9 : vector<48xf32> to vector<48x1xf32>
    %cst_4 = arith.constant 3.200000e+01 : f32
    %11 = vector.broadcast %cst_4 : f32 to vector<48x1xf32>
    %12 = arith.divf %10, %11 : vector<48x1xf32>
    %cst_5 = arith.constant 9.99999974E-6 : f32
    %13 = vector.broadcast %cst_5 : f32 to vector<48x1xf32>
    %14 = arith.addf %12, %13 : vector<48x1xf32>
    %15 = math.rsqrt %14 : vector<48x1xf32>
    %16 = vector.broadcast %15 : vector<48x1xf32> to vector<48x32xf32>
    %17 = arith.mulf %7, %16 : vector<48x32xf32>
    %c0_6 = arith.constant 0 : index
    %c0_7 = arith.constant 0 : index
    %18 = vector.load %arg5[%c0_6, %c0_7] : memref<1x32xf32, #tpu.memory_space<vmem>>, vector<1x32xf32>
    %19 = vector.broadcast %18 : vector<1x32xf32> to vector<48x32xf32>
    %20 = arith.mulf %17, %19 : vector<48x32xf32>
    %c0_8 = arith.constant 0 : index
    %c0_9 = arith.constant 0 : index
    %21 = vector.load %arg6[%c0_8, %c0_9] : memref<1x32xf32, #tpu.memory_space<vmem>>, vector<1x32xf32>
    %22 = vector.broadcast %21 : vector<1x32xf32> to vector<48x32xf32>
    %23 = arith.addf %20, %22 : vector<48x32xf32>
    %c0_i32 = arith.constant 0 : i32
    %c32_i32 = arith.constant 32 : i32
    %24 = arith.addi %c0_i32, %c32_i32 : i32
    %c1_i32 = arith.constant 1 : i32
    scf.for %arg16 = %c0_i32 to %24 step %c1_i32  : i32 {
      %c1_i32_106 = arith.constant 1 : i32
      %136 = arith.muli %arg16, %c1_i32_106 : i32
      %c0_i32_107 = arith.constant 0 : i32
      %137 = arith.addi %c0_i32_107, %136 : i32
      %138 = arith.index_cast %137 : i32 to index
      %c0_108 = arith.constant 0 : index
      %c0_109 = arith.constant 0 : index
      %139 = vector.load %arg7[%138, %c0_108, %c0_109] : memref<32x32x32xf32, #tpu.memory_space<vmem>>, vector<1x32x32xf32>
      %140 = vector.shape_cast %139 : vector<1x32x32xf32> to vector<32x32xf32>
      %cst_110 = arith.constant dense<0.000000e+00> : vector<48x32xf32>
      %141 = tpu.matmul %23, %140, %cst_110 {dimension_numbers = #tpu.dot_dimension_numbers<[1], [0], [0], [1], [0, 0, 1, 1], [], []>} : vector<48x32xf32>, vector<32x32xf32>, vector<48x32xf32> -> vector<48x32xf32>
      %142 = arith.index_cast %137 : i32 to index
      %c0_111 = arith.constant 0 : index
      %c0_112 = arith.constant 0 : index
      %143 = vector.load %arg12[%142, %c0_111, %c0_112] : memref<32x48x32xf32, #tpu.memory_space<vmem>>, vector<1x48x32xf32>
      %144 = vector.shape_cast %143 : vector<1x48x32xf32> to vector<48x32xf32>
      %145 = vector.shape_cast %141 : vector<48x32xf32> to vector<1x48x32xf32>
      tpu.vector_store %arg12[%142, %c0_111, %c0_112], %145 {strides = array<i32>} : memref<32x48x32xf32, #tpu.memory_space<vmem>>, vector<1x48x32xf32>,
    }
    %c32_i32_10 = arith.constant 32 : i32
    %c0_11 = arith.constant 0 : index
    %c0_12 = arith.constant 0 : index
    %c0_13 = arith.constant 0 : index
    %25 = vector.load %arg2[%c0_11, %c0_12, %c0_13] : memref<1x16x16xf32, #tpu.memory_space<vmem>>, vector<1x16x16xf32>
    %26 = vector.shape_cast %25 : vector<1x16x16xf32> to vector<16x16xf32>
    %c0_14 = arith.constant 0 : index
    %27 = memref.load %arg4[%c0_14] : memref<8xf32, #tpu.memory_space<smem>>
    %28 = vector.broadcast %27 : f32 to vector<16x16xf32>
    %29 = arith.mulf %26, %28 : vector<16x16xf32>
    %c0_15 = arith.constant 0 : index
    %c0_16 = arith.constant 0 : index
    %c0_17 = arith.constant 0 : index
    %30 = vector.load %arg14[%c0_15, %c0_16, %c0_17] : memref<8x16x16xf32, #tpu.memory_space<vmem>>, vector<1x16x16xf32>
    %31 = vector.shape_cast %30 : vector<1x16x16xf32> to vector<16x16xf32>
    %32 = vector.shape_cast %29 : vector<16x16xf32> to vector<1x16x16xf32>
    tpu.vector_store %arg14[%c0_15, %c0_16, %c0_17], %32 {strides = array<i32>} : memref<8x16x16xf32, #tpu.memory_space<vmem>>, vector<1x16x16xf32>,
    %c1 = arith.constant 1 : index
    %33 = memref.load %arg4[%c1] : memref<8xf32, #tpu.memory_space<smem>>
    %34 = vector.broadcast %33 : f32 to vector<16x16xf32>
    %35 = arith.mulf %26, %34 : vector<16x16xf32>
    %c1_18 = arith.constant 1 : index
    %c0_19 = arith.constant 0 : index
    %c0_20 = arith.constant 0 : index
    %36 = vector.load %arg14[%c1_18, %c0_19, %c0_20] : memref<8x16x16xf32, #tpu.memory_space<vmem>>, vector<1x16x16xf32>
    %37 = vector.shape_cast %36 : vector<1x16x16xf32> to vector<16x16xf32>
    %38 = vector.shape_cast %35 : vector<16x16xf32> to vector<1x16x16xf32>
    tpu.vector_store %arg14[%c1_18, %c0_19, %c0_20], %38 {strides = array<i32>} : memref<8x16x16xf32, #tpu.memory_space<vmem>>, vector<1x16x16xf32>,
    %c2 = arith.constant 2 : index
    %39 = memref.load %arg4[%c2] : memref<8xf32, #tpu.memory_space<smem>>
    %40 = vector.broadcast %39 : f32 to vector<16x16xf32>
    %41 = arith.mulf %26, %40 : vector<16x16xf32>
    %c2_21 = arith.constant 2 : index
    %c0_22 = arith.constant 0 : index
    %c0_23 = arith.constant 0 : index
    %42 = vector.load %arg14[%c2_21, %c0_22, %c0_23] : memref<8x16x16xf32, #tpu.memory_space<vmem>>, vector<1x16x16xf32>
    %43 = vector.shape_cast %42 : vector<1x16x16xf32> to vector<16x16xf32>
    %44 = vector.shape_cast %41 : vector<16x16xf32> to vector<1x16x16xf32>
    tpu.vector_store %arg14[%c2_21, %c0_22, %c0_23], %44 {strides = array<i32>} : memref<8x16x16xf32, #tpu.memory_space<vmem>>, vector<1x16x16xf32>,
    %c3 = arith.constant 3 : index
    %45 = memref.load %arg4[%c3] : memref<8xf32, #tpu.memory_space<smem>>
    %46 = vector.broadcast %45 : f32 to vector<16x16xf32>
    %47 = arith.mulf %26, %46 : vector<16x16xf32>
    %c3_24 = arith.constant 3 : index
    %c0_25 = arith.constant 0 : index
    %c0_26 = arith.constant 0 : index
    %48 = vector.load %arg14[%c3_24, %c0_25, %c0_26] : memref<8x16x16xf32, #tpu.memory_space<vmem>>, vector<1x16x16xf32>
    %49 = vector.shape_cast %48 : vector<1x16x16xf32> to vector<16x16xf32>
    %50 = vector.shape_cast %47 : vector<16x16xf32> to vector<1x16x16xf32>
    tpu.vector_store %arg14[%c3_24, %c0_25, %c0_26], %50 {strides = array<i32>} : memref<8x16x16xf32, #tpu.memory_space<vmem>>, vector<1x16x16xf32>,
    %c4 = arith.constant 4 : index
    %51 = memref.load %arg4[%c4] : memref<8xf32, #tpu.memory_space<smem>>
    %52 = vector.broadcast %51 : f32 to vector<16x16xf32>
    %53 = arith.mulf %26, %52 : vector<16x16xf32>
    %c4_27 = arith.constant 4 : index
    %c0_28 = arith.constant 0 : index
    %c0_29 = arith.constant 0 : index
    %54 = vector.load %arg14[%c4_27, %c0_28, %c0_29] : memref<8x16x16xf32, #tpu.memory_space<vmem>>, vector<1x16x16xf32>
    %55 = vector.shape_cast %54 : vector<1x16x16xf32> to vector<16x16xf32>
    %56 = vector.shape_cast %53 : vector<16x16xf32> to vector<1x16x16xf32>
    tpu.vector_store %arg14[%c4_27, %c0_28, %c0_29], %56 {strides = array<i32>} : memref<8x16x16xf32, #tpu.memory_space<vmem>>, vector<1x16x16xf32>,
    %c5 = arith.constant 5 : index
    %57 = memref.load %arg4[%c5] : memref<8xf32, #tpu.memory_space<smem>>
    %58 = vector.broadcast %57 : f32 to vector<16x16xf32>
    %59 = arith.mulf %26, %58 : vector<16x16xf32>
    %c5_30 = arith.constant 5 : index
    %c0_31 = arith.constant 0 : index
    %c0_32 = arith.constant 0 : index
    %60 = vector.load %arg14[%c5_30, %c0_31, %c0_32] : memref<8x16x16xf32, #tpu.memory_space<vmem>>, vector<1x16x16xf32>
    %61 = vector.shape_cast %60 : vector<1x16x16xf32> to vector<16x16xf32>
    %62 = vector.shape_cast %59 : vector<16x16xf32> to vector<1x16x16xf32>
    tpu.vector_store %arg14[%c5_30, %c0_31, %c0_32], %62 {strides = array<i32>} : memref<8x16x16xf32, #tpu.memory_space<vmem>>, vector<1x16x16xf32>,
    %c6 = arith.constant 6 : index
    %63 = memref.load %arg4[%c6] : memref<8xf32, #tpu.memory_space<smem>>
    %64 = vector.broadcast %63 : f32 to vector<16x16xf32>
    %65 = arith.mulf %26, %64 : vector<16x16xf32>
    %c6_33 = arith.constant 6 : index
    %c0_34 = arith.constant 0 : index
    %c0_35 = arith.constant 0 : index
    %66 = vector.load %arg14[%c6_33, %c0_34, %c0_35] : memref<8x16x16xf32, #tpu.memory_space<vmem>>, vector<1x16x16xf32>
    %67 = vector.shape_cast %66 : vector<1x16x16xf32> to vector<16x16xf32>
    %68 = vector.shape_cast %65 : vector<16x16xf32> to vector<1x16x16xf32>
    tpu.vector_store %arg14[%c6_33, %c0_34, %c0_35], %68 {strides = array<i32>} : memref<8x16x16xf32, #tpu.memory_space<vmem>>, vector<1x16x16xf32>,
    %c7 = arith.constant 7 : index
    %69 = memref.load %arg4[%c7] : memref<8xf32, #tpu.memory_space<smem>>
    %70 = vector.broadcast %69 : f32 to vector<16x16xf32>
    %71 = arith.mulf %26, %70 : vector<16x16xf32>
    %c7_36 = arith.constant 7 : index
    %c0_37 = arith.constant 0 : index
    %c0_38 = arith.constant 0 : index
    %72 = vector.load %arg14[%c7_36, %c0_37, %c0_38] : memref<8x16x16xf32, #tpu.memory_space<vmem>>, vector<1x16x16xf32>
    %73 = vector.shape_cast %72 : vector<1x16x16xf32> to vector<16x16xf32>
    %74 = vector.shape_cast %71 : vector<16x16xf32> to vector<1x16x16xf32>
    tpu.vector_store %arg14[%c7_36, %c0_37, %c0_38], %74 {strides = array<i32>} : memref<8x16x16xf32, #tpu.memory_space<vmem>>, vector<1x16x16xf32>,
    %75 = tpu.iota {dimensions = array<i32: 0>} : vector<16x16xi32>
    %76 = tpu.iota {dimensions = array<i32: 1>} : vector<16x16xi32>
    %c0_i32_39 = arith.constant 0 : i32
    %c3_i32 = arith.constant 3 : i32
    %77 = arith.addi %c0_i32_39, %c3_i32 : i32
    %c1_i32_40 = arith.constant 1 : i32
    scf.for %arg16 = %c0_i32_39 to %77 step %c1_i32_40  : i32 {
      %c1_i32_106 = arith.constant 1 : i32
      %136 = arith.muli %arg16, %c1_i32_106 : i32
      %c0_i32_107 = arith.constant 0 : i32
      %137 = arith.addi %c0_i32_107, %136 : i32
      %c16_i32 = arith.constant 16 : i32
      %138 = arith.muli %137, %c16_i32 : i32
      %139 = tpu.assume_multiple %138, 16 : i32
      %c0_108 = arith.constant 0 : index
      %140 = arith.index_cast %137 : i32 to index
      %c0_109 = arith.constant 0 : index
      %141 = vector.load %arg3[%c0_108, %140, %c0_109] : memref<1x3x16xf32, #tpu.memory_space<vmem>>, vector<1x1x16xf32>
      %142 = vector.shape_cast %141 : vector<1x1x16xf32> to vector<1x16xf32>
      %cst_110 = arith.constant 1.000000e+00 : f32
      %143 = vector.broadcast %cst_110 : f32 to vector<1x16xf32>
      %144 = arith.subf %142, %143 : vector<1x16xf32>
      %cst_111 = arith.constant 1.000000e+09 : f32
      %145 = vector.broadcast %cst_111 : f32 to vector<1x16xf32>
      %146 = arith.mulf %145, %144 : vector<1x16xf32>
      %c0_112 = arith.constant 0 : index
      %147 = arith.index_cast %139 : i32 to index
      %c0_113 = arith.constant 0 : index
      %148 = vector.load %arg12[%c0_112, %147, %c0_113] : memref<32x48x32xf32, #tpu.memory_space<vmem>>, vector<8x16x32xf32>
      %c8 = arith.constant 8 : index
      %149 = arith.index_cast %139 : i32 to index
      %c0_114 = arith.constant 0 : index
      %150 = vector.load %arg12[%c8, %149, %c0_114] : memref<32x48x32xf32, #tpu.memory_space<vmem>>, vector<8x16x32xf32>
      %c16 = arith.constant 16 : index
      %151 = arith.index_cast %139 : i32 to index
      %c0_115 = arith.constant 0 : index
      %152 = vector.load %arg12[%c16, %151, %c0_115] : memref<32x48x32xf32, #tpu.memory_space<vmem>>, vector<8x16x32xf32>
      %c24 = arith.constant 24 : index
      %153 = arith.index_cast %139 : i32 to index
      %c0_116 = arith.constant 0 : index
      %154 = vector.load %arg12[%c24, %153, %c0_116] : memref<32x48x32xf32, #tpu.memory_space<vmem>>, vector<8x16x32xf32>
      %c0_117 = arith.constant 0 : index
      %c0_118 = arith.constant 0 : index
      %c0_119 = arith.constant 0 : index
      %155 = vector.load %arg8[%c0_117, %c0_118, %c0_119] : memref<8x1x32xf32, #tpu.memory_space<vmem>>, vector<8x1x32xf32>
      %156 = vector.broadcast %155 : vector<8x1x32xf32> to vector<8x16x32xf32>
      %157 = arith.addf %154, %156 : vector<8x16x32xf32>
      %158 = arith.negf %157 : vector<8x16x32xf32>
      %159 = math.exp %158 : vector<8x16x32xf32>
      %cst_120 = arith.constant 1.000000e+00 : f32
      %160 = vector.broadcast %cst_120 : f32 to vector<8x16x32xf32>
      %161 = arith.addf %160, %159 : vector<8x16x32xf32>
      %162 = arith.divf %160, %161 : vector<8x16x32xf32>
      "tpu.trace_start"() <{level = 10 : i32, message = "hqc,hkc->hqk"}> : () -> ()
      %cst_121 = arith.constant dense<0.000000e+00> : vector<8x16x16xf32>
      %163 = tpu.matmul %148, %150, %cst_121 {dimension_numbers = #tpu.dot_dimension_numbers<[2], [2], [1], [1], [0, 0, 0, 1, 1, 1], [0], [0]>} : vector<8x16x32xf32>, vector<8x16x32xf32>, vector<8x16x16xf32> -> vector<8x16x16xf32>
      "tpu.trace_stop"() : () -> ()
      %c0_122 = arith.constant 0 : index
      %c0_123 = arith.constant 0 : index
      %c0_124 = arith.constant 0 : index
      %164 = vector.load %arg14[%c0_122, %c0_123, %c0_124] : memref<8x16x16xf32, #tpu.memory_space<vmem>>, vector<8x16x16xf32>
      %165 = arith.addf %163, %164 : vector<8x16x16xf32>
      %166 = vector.shape_cast %146 : vector<1x16xf32> to vector<1x1x16xf32>
      %167 = vector.broadcast %166 : vector<1x1x16xf32> to vector<8x16x16xf32>
      %168 = arith.addf %165, %167 : vector<8x16x16xf32>
      %cst_125 = arith.constant dense<0xFF800000> : vector<8x16xf32>
      %169 = vector.multi_reduction <maximumf>, %168, %cst_125 [2] : vector<8x16x16xf32> to vector<8x16xf32>
      %170 = vector.shape_cast %169 : vector<8x16xf32> to vector<8x16x1xf32>
      %171 = vector.broadcast %170 : vector<8x16x1xf32> to vector<8x16x16xf32>
      %172 = arith.subf %168, %171 : vector<8x16x16xf32>
      %173 = math.exp %172 : vector<8x16x16xf32>
      %cst_126 = arith.constant dense<0.000000e+00> : vector<8x16xf32>
      %174 = vector.multi_reduction <add>, %173, %cst_126 [2] : vector<8x16x16xf32> to vector<8x16xf32>
      %175 = vector.shape_cast %174 : vector<8x16xf32> to vector<8x16x1xf32>
      %176 = tpu.reciprocal %175 {approx = true} : vector<8x16x1xf32> -> vector<8x16x1xf32>
      %177 = vector.broadcast %176 : vector<8x16x1xf32> to vector<8x16x16xf32>
      %178 = arith.mulf %173, %177 : vector<8x16x16xf32>
      "tpu.trace_start"() <{level = 10 : i32, message = "hqk,hkc->hqc"}> : () -> ()
      %cst_127 = arith.constant dense<0.000000e+00> : vector<8x16x32xf32>
      %179 = tpu.matmul %178, %152, %cst_127 {dimension_numbers = #tpu.dot_dimension_numbers<[2], [1], [1], [2], [0, 0, 0, 1, 1, 2], [0], [0]>} : vector<8x16x16xf32>, vector<8x16x32xf32>, vector<8x16x32xf32> -> vector<8x16x32xf32>
      "tpu.trace_stop"() : () -> ()
      %180 = arith.mulf %162, %179 : vector<8x16x32xf32>
      %c0_128 = arith.constant 0 : index
      %181 = arith.index_cast %139 : i32 to index
      %c0_129 = arith.constant 0 : index
      %182 = vector.load %arg13[%c0_128, %181, %c0_129] : memref<8x48x32xf32, #tpu.memory_space<vmem>>, vector<8x16x32xf32>
      tpu.vector_store %arg13[%c0_128, %181, %c0_129], %180 {strides = array<i32>} : memref<8x48x32xf32, #tpu.memory_space<vmem>>, vector<8x16x32xf32>,
      %183 = arith.cmpi eq, %75, %76 : vector<16x16xi32>
      %cst_130 = arith.constant 0.000000e+00 : f32
      %184 = vector.shape_cast %142 : vector<1x16xf32> to vector<1x16xf32>
      %185 = vector.broadcast %184 : vector<1x16xf32> to vector<16x16xf32>
      %186 = vector.broadcast %cst_130 : f32 to vector<16x16xf32>
      %187 = arith.select %183, %185, %186 : vector<16x16xi1>, vector<16x16xf32>
      %cst_131 = arith.constant dense<0.000000e+00> : vector<16xf32>
      %188 = vector.multi_reduction <add>, %187, %cst_131 [1] : vector<16x16xf32> to vector<16xf32>
      %189 = vector.shape_cast %188 : vector<16xf32> to vector<16x1xf32>
      %190 = arith.index_cast %139 : i32 to index
      %c0_132 = arith.constant 0 : index
      %191 = vector.load %arg15[%190, %c0_132] : memref<48x1xf32, #tpu.memory_space<vmem>>, vector<16x1xf32>
      tpu.vector_store %arg15[%190, %c0_132], %189 {strides = array<i32>} : memref<48x1xf32, #tpu.memory_space<vmem>>, vector<16x1xf32>,
    }
    %c3_i32_41 = arith.constant 3 : i32
    %cst_42 = arith.constant 0.000000e+00 : f32
    %78 = vector.broadcast %cst_42 : f32 to vector<48x32xf32>
    %c0_43 = arith.constant 0 : index
    %c0_44 = arith.constant 0 : index
    %c0_45 = arith.constant 0 : index
    %79 = vector.load %arg13[%c0_43, %c0_44, %c0_45] : memref<8x48x32xf32, #tpu.memory_space<vmem>>, vector<1x48x32xf32>
    %80 = vector.shape_cast %79 : vector<1x48x32xf32> to vector<48x32xf32>
    %c0_46 = arith.constant 0 : index
    %c0_47 = arith.constant 0 : index
    %c0_48 = arith.constant 0 : index
    %81 = vector.load %arg9[%c0_46, %c0_47, %c0_48] : memref<8x32x32xf32, #tpu.memory_space<vmem>>, vector<1x32x32xf32>
    %82 = vector.shape_cast %81 : vector<1x32x32xf32> to vector<32x32xf32>
    %cst_49 = arith.constant dense<0.000000e+00> : vector<48x32xf32>
    %83 = tpu.matmul %80, %82, %cst_49 {dimension_numbers = #tpu.dot_dimension_numbers<[1], [0], [0], [1], [0, 0, 1, 1], [], []>} : vector<48x32xf32>, vector<32x32xf32>, vector<48x32xf32> -> vector<48x32xf32>
    %84 = arith.addf %78, %83 : vector<48x32xf32>
    %c1_50 = arith.constant 1 : index
    %c0_51 = arith.constant 0 : index
    %c0_52 = arith.constant 0 : index
    %85 = vector.load %arg13[%c1_50, %c0_51, %c0_52] : memref<8x48x32xf32, #tpu.memory_space<vmem>>, vector<1x48x32xf32>
    %86 = vector.shape_cast %85 : vector<1x48x32xf32> to vector<48x32xf32>
    %c1_53 = arith.constant 1 : index
    %c0_54 = arith.constant 0 : index
    %c0_55 = arith.constant 0 : index
    %87 = vector.load %arg9[%c1_53, %c0_54, %c0_55] : memref<8x32x32xf32, #tpu.memory_space<vmem>>, vector<1x32x32xf32>
    %88 = vector.shape_cast %87 : vector<1x32x32xf32> to vector<32x32xf32>
    %cst_56 = arith.constant dense<0.000000e+00> : vector<48x32xf32>
    %89 = tpu.matmul %86, %88, %cst_56 {dimension_numbers = #tpu.dot_dimension_numbers<[1], [0], [0], [1], [0, 0, 1, 1], [], []>} : vector<48x32xf32>, vector<32x32xf32>, vector<48x32xf32> -> vector<48x32xf32>
    %90 = arith.addf %84, %89 : vector<48x32xf32>
    %c2_57 = arith.constant 2 : index
    %c0_58 = arith.constant 0 : index
    %c0_59 = arith.constant 0 : index
    %91 = vector.load %arg13[%c2_57, %c0_58, %c0_59] : memref<8x48x32xf32, #tpu.memory_space<vmem>>, vector<1x48x32xf32>
    %92 = vector.shape_cast %91 : vector<1x48x32xf32> to vector<48x32xf32>
    %c2_60 = arith.constant 2 : index
    %c0_61 = arith.constant 0 : index
    %c0_62 = arith.constant 0 : index
    %93 = vector.load %arg9[%c2_60, %c0_61, %c0_62] : memref<8x32x32xf32, #tpu.memory_space<vmem>>, vector<1x32x32xf32>
    %94 = vector.shape_cast %93 : vector<1x32x32xf32> to vector<32x32xf32>
    %cst_63 = arith.constant dense<0.000000e+00> : vector<48x32xf32>
    %95 = tpu.matmul %92, %94, %cst_63 {dimension_numbers = #tpu.dot_dimension_numbers<[1], [0], [0], [1], [0, 0, 1, 1], [], []>} : vector<48x32xf32>, vector<32x32xf32>, vector<48x32xf32> -> vector<48x32xf32>
    %96 = arith.addf %90, %95 : vector<48x32xf32>
    %c3_64 = arith.constant 3 : index
    %c0_65 = arith.constant 0 : index
    %c0_66 = arith.constant 0 : index
    %97 = vector.load %arg13[%c3_64, %c0_65, %c0_66] : memref<8x48x32xf32, #tpu.memory_space<vmem>>, vector<1x48x32xf32>
    %98 = vector.shape_cast %97 : vector<1x48x32xf32> to vector<48x32xf32>
    %c3_67 = arith.constant 3 : index
    %c0_68 = arith.constant 0 : index
    %c0_69 = arith.constant 0 : index
    %99 = vector.load %arg9[%c3_67, %c0_68, %c0_69] : memref<8x32x32xf32, #tpu.memory_space<vmem>>, vector<1x32x32xf32>
    %100 = vector.shape_cast %99 : vector<1x32x32xf32> to vector<32x32xf32>
    %cst_70 = arith.constant dense<0.000000e+00> : vector<48x32xf32>
    %101 = tpu.matmul %98, %100, %cst_70 {dimension_numbers = #tpu.dot_dimension_numbers<[1], [0], [0], [1], [0, 0, 1, 1], [], []>} : vector<48x32xf32>, vector<32x32xf32>, vector<48x32xf32> -> vector<48x32xf32>
    %102 = arith.addf %96, %101 : vector<48x32xf32>
    %c4_71 = arith.constant 4 : index
    %c0_72 = arith.constant 0 : index
    %c0_73 = arith.constant 0 : index
    %103 = vector.load %arg13[%c4_71, %c0_72, %c0_73] : memref<8x48x32xf32, #tpu.memory_space<vmem>>, vector<1x48x32xf32>
    %104 = vector.shape_cast %103 : vector<1x48x32xf32> to vector<48x32xf32>
    %c4_74 = arith.constant 4 : index
    %c0_75 = arith.constant 0 : index
    %c0_76 = arith.constant 0 : index
    %105 = vector.load %arg9[%c4_74, %c0_75, %c0_76] : memref<8x32x32xf32, #tpu.memory_space<vmem>>, vector<1x32x32xf32>
    %106 = vector.shape_cast %105 : vector<1x32x32xf32> to vector<32x32xf32>
    %cst_77 = arith.constant dense<0.000000e+00> : vector<48x32xf32>
    %107 = tpu.matmul %104, %106, %cst_77 {dimension_numbers = #tpu.dot_dimension_numbers<[1], [0], [0], [1], [0, 0, 1, 1], [], []>} : vector<48x32xf32>, vector<32x32xf32>, vector<48x32xf32> -> vector<48x32xf32>
    %108 = arith.addf %102, %107 : vector<48x32xf32>
    %c5_78 = arith.constant 5 : index
    %c0_79 = arith.constant 0 : index
    %c0_80 = arith.constant 0 : index
    %109 = vector.load %arg13[%c5_78, %c0_79, %c0_80] : memref<8x48x32xf32, #tpu.memory_space<vmem>>, vector<1x48x32xf32>
    %110 = vector.shape_cast %109 : vector<1x48x32xf32> to vector<48x32xf32>
    %c5_81 = arith.constant 5 : index
    %c0_82 = arith.constant 0 : index
    %c0_83 = arith.constant 0 : index
    %111 = vector.load %arg9[%c5_81, %c0_82, %c0_83] : memref<8x32x32xf32, #tpu.memory_space<vmem>>, vector<1x32x32xf32>
    %112 = vector.shape_cast %111 : vector<1x32x32xf32> to vector<32x32xf32>
    %cst_84 = arith.constant dense<0.000000e+00> : vector<48x32xf32>
    %113 = tpu.matmul %110, %112, %cst_84 {dimension_numbers = #tpu.dot_dimension_numbers<[1], [0], [0], [1], [0, 0, 1, 1], [], []>} : vector<48x32xf32>, vector<32x32xf32>, vector<48x32xf32> -> vector<48x32xf32>
    %114 = arith.addf %108, %113 : vector<48x32xf32>
    %c6_85 = arith.constant 6 : index
    %c0_86 = arith.constant 0 : index
    %c0_87 = arith.constant 0 : index
    %115 = vector.load %arg13[%c6_85, %c0_86, %c0_87] : memref<8x48x32xf32, #tpu.memory_space<vmem>>, vector<1x48x32xf32>
    %116 = vector.shape_cast %115 : vector<1x48x32xf32> to vector<48x32xf32>
    %c6_88 = arith.constant 6 : index
    %c0_89 = arith.constant 0 : index
    %c0_90 = arith.constant 0 : index
    %117 = vector.load %arg9[%c6_88, %c0_89, %c0_90] : memref<8x32x32xf32, #tpu.memory_space<vmem>>, vector<1x32x32xf32>
    %118 = vector.shape_cast %117 : vector<1x32x32xf32> to vector<32x32xf32>
    %cst_91 = arith.constant dense<0.000000e+00> : vector<48x32xf32>
    %119 = tpu.matmul %116, %118, %cst_91 {dimension_numbers = #tpu.dot_dimension_numbers<[1], [0], [0], [1], [0, 0, 1, 1], [], []>} : vector<48x32xf32>, vector<32x32xf32>, vector<48x32xf32> -> vector<48x32xf32>
    %120 = arith.addf %114, %119 : vector<48x32xf32>
    %c7_92 = arith.constant 7 : index
    %c0_93 = arith.constant 0 : index
    %c0_94 = arith.constant 0 : index
    %121 = vector.load %arg13[%c7_92, %c0_93, %c0_94] : memref<8x48x32xf32, #tpu.memory_space<vmem>>, vector<1x48x32xf32>
    %122 = vector.shape_cast %121 : vector<1x48x32xf32> to vector<48x32xf32>
    %c7_95 = arith.constant 7 : index
    %c0_96 = arith.constant 0 : index
    %c0_97 = arith.constant 0 : index
    %123 = vector.load %arg9[%c7_95, %c0_96, %c0_97] : memref<8x32x32xf32, #tpu.memory_space<vmem>>, vector<1x32x32xf32>
    %124 = vector.shape_cast %123 : vector<1x32x32xf32> to vector<32x32xf32>
    %cst_98 = arith.constant dense<0.000000e+00> : vector<48x32xf32>
    %125 = tpu.matmul %122, %124, %cst_98 {dimension_numbers = #tpu.dot_dimension_numbers<[1], [0], [0], [1], [0, 0, 1, 1], [], []>} : vector<48x32xf32>, vector<32x32xf32>, vector<48x32xf32> -> vector<48x32xf32>
    %126 = arith.addf %120, %125 : vector<48x32xf32>
    %c0_99 = arith.constant 0 : index
    %c0_100 = arith.constant 0 : index
    %127 = vector.load %arg10[%c0_99, %c0_100] : memref<1x32xf32, #tpu.memory_space<vmem>>, vector<1x32xf32>
    %128 = vector.broadcast %127 : vector<1x32xf32> to vector<48x32xf32>
    %129 = arith.addf %126, %128 : vector<48x32xf32>
    %c0_101 = arith.constant 0 : index
    %c0_102 = arith.constant 0 : index
    %130 = vector.load %arg15[%c0_101, %c0_102] : memref<48x1xf32, #tpu.memory_space<vmem>>, vector<48x1xf32>
    %131 = vector.broadcast %130 : vector<48x1xf32> to vector<48x32xf32>
    %132 = arith.mulf %129, %131 : vector<48x32xf32>
    %c0_103 = arith.constant 0 : index
    %c0_104 = arith.constant 0 : index
    %c0_105 = arith.constant 0 : index
    %133 = vector.load %arg11[%c0_103, %c0_104, %c0_105] : memref<1x48x32xf32, #tpu.memory_space<vmem>>, vector<1x48x32xf32>
    %134 = vector.shape_cast %133 : vector<1x48x32xf32> to vector<48x32xf32>
    %135 = vector.shape_cast %132 : vector<48x32xf32> to vector<1x48x32xf32>
    tpu.vector_store %arg11[%c0_103, %c0_104, %c0_105], %135 {strides = array<i32>} : memref<1x48x32xf32, #tpu.memory_space<vmem>>, vector<1x48x32xf32>,
    return
  }
  func.func @transform_0(%arg0: i32) -> (i32, i32, i32) {
    %c0_i32 = arith.constant 0 : i32
    %c0_i32_0 = arith.constant 0 : i32
    %c0_i32_1 = arith.constant 0 : i32
    return %arg0, %c0_i32, %c0_i32_0 : i32, i32, i32
  }
  func.func @transform_1(%arg0: i32) -> (i32, i32, i32) {
    %c0_i32 = arith.constant 0 : i32
    %c0_i32_0 = arith.constant 0 : i32
    %c0_i32_1 = arith.constant 0 : i32
    return %arg0, %c0_i32, %c0_i32_0 : i32, i32, i32
  }
  func.func @transform_2(%arg0: i32) -> (i32, i32, i32) {
    %c0_i32 = arith.constant 0 : i32
    %c0_i32_0 = arith.constant 0 : i32
    %c0_i32_1 = arith.constant 0 : i32
    return %arg0, %c0_i32, %c0_i32_0 : i32, i32, i32
  }
  func.func @transform_3(%arg0: i32) -> i32 {
    %c0_i32 = arith.constant 0 : i32
    %c0_i32_0 = arith.constant 0 : i32
    return %c0_i32 : i32
  }
  func.func @transform_4(%arg0: i32) -> (i32, i32) {
    %c0_i32 = arith.constant 0 : i32
    %c0_i32_0 = arith.constant 0 : i32
    %c0_i32_1 = arith.constant 0 : i32
    return %c0_i32, %c0_i32_0 : i32, i32
  }
  func.func @transform_5(%arg0: i32) -> (i32, i32) {
    %c0_i32 = arith.constant 0 : i32
    %c0_i32_0 = arith.constant 0 : i32
    %c0_i32_1 = arith.constant 0 : i32
    return %c0_i32, %c0_i32_0 : i32, i32
  }
  func.func @transform_6(%arg0: i32) -> (i32, i32, i32) {
    %c0_i32 = arith.constant 0 : i32
    %c0_i32_0 = arith.constant 0 : i32
    %c0_i32_1 = arith.constant 0 : i32
    %c0_i32_2 = arith.constant 0 : i32
    return %c0_i32, %c0_i32_0, %c0_i32_1 : i32, i32, i32
  }
  func.func @transform_7(%arg0: i32) -> (i32, i32, i32) {
    %c0_i32 = arith.constant 0 : i32
    %c0_i32_0 = arith.constant 0 : i32
    %c0_i32_1 = arith.constant 0 : i32
    %c0_i32_2 = arith.constant 0 : i32
    return %c0_i32, %c0_i32_0, %c0_i32_1 : i32, i32, i32
  }
  func.func @transform_8(%arg0: i32) -> (i32, i32, i32) {
    %c0_i32 = arith.constant 0 : i32
    %c0_i32_0 = arith.constant 0 : i32
    %c0_i32_1 = arith.constant 0 : i32
    %c0_i32_2 = arith.constant 0 : i32
    return %c0_i32, %c0_i32_0, %c0_i32_1 : i32, i32, i32
  }
  func.func @transform_9(%arg0: i32) -> (i32, i32) {
    %c0_i32 = arith.constant 0 : i32
    %c0_i32_0 = arith.constant 0 : i32
    %c0_i32_1 = arith.constant 0 : i32
    return %c0_i32, %c0_i32_0 : i32, i32
  }
  func.func @transform_10(%arg0: i32) -> (i32, i32, i32) {
    %c0_i32 = arith.constant 0 : i32
    %c0_i32_0 = arith.constant 0 : i32
    %c0_i32_1 = arith.constant 0 : i32
    return %arg0, %c0_i32, %c0_i32_0 : i32, i32, i32
  }
}

</mosaic_0001>

<bundles_post_ra>
// kernel: tpu_custom_call.1
= control target key start
LH: loop header
LB: loop body
LE: loop exit
PB: predicated region body
PF: predicated region fallthrough
CT: control target
= control target key end

     0   :  { %15 = vsyncpa [#allocation8], 0  ;;  %s5477_s0 = inlined_call_operand.vmem [shape: f32[2,48,32], index: 0, kind: input, shape index: {}]   ;;  %s5478_s1 = inlined_call_operand.vmem [shape: f32[2,16,16], index: 1, kind: input, shape index: {}]   ;;  %s5479_s2 = inlined_call_operand.vmem [shape: f32[2,3,16], index: 2, kind: input, shape index: {}]   ;;  %s5480_s3 = inlined_call_operand.vmem [shape: f32[8], index: 3, kind: input, shape index: {}]   ;;  %s5481_s4 = inlined_call_operand.vmem [shape: f32[1,32], index: 4, kind: input, shape index: {}]   ;;  %s5482_s5 = inlined_call_operand.vmem [shape: f32[1,32], index: 5, kind: input, shape index: {}]   ;;  %s5483_s6 = inlined_call_operand.hbm [shape: f32[32,32,32], index: 6, kind: input, shape index: {}]   ;;  %s5484_s7 = inlined_call_operand.vmem [shape: f32[8,1,32], index: 7, kind: input, shape index: {}]   ;;  %s5485_s8 = inlined_call_operand.hbm [shape: f32[8,32,32], index: 8, kind: input, shape index: {}]   ;;  %s5486_s9 = inlined_call_operand.vmem [shape: f32[1,32], index: 9, kind: input, shape index: {}]   ;;  %s5487_s10 = inlined_call_operand.vmem [shape: f32[2,48,32], index: 10, kind: output, shape index: {}]  }
   0x1   :  { %16 = vsyncpa [#allocation7], 0 }
   0x2   :  { %17 = vsyncpa [#allocation11], 0  ;;  %s4845_s13 = smov 0  }
   0x3 LB: > { %s292_s16 = sshll.u32 %s5480_s3, 4  ;;  %s4854_s17 = sadd.s32 4294967295, %s4774_s13   ;;  %s4774_s13 = sphi %s4845_s13, %s23_s13   ;;  %s293_s16 = int_to_ptr.vmem [resolvable:$true] %s292_s16 }
   0x4   : > { %p3846_p0 = scmp.ge.s32.totalorder %s4774_s13, 1  ;;  %p279_p1 = scmp.lt.s32.totalorder %s4774_s13, 3 }
   0x5   : > { %p5488_p2 = scmp.eq.s32.totalorder %s4854_s17, 0  ;;  %s4784_s19 = smov [#allocation9]  }
   0x6   : > { %p4859_p3 = pnand %p3846_p0, %p279_p1  ;;  %s308_s20 = sshll.u32 %s4784_s19, 4  ;;  %s309_s20 = int_to_ptr.vmem [resolvable:$true] %s308_s20 }
   0x7   : > { %s4785_s22 = smov [#allocation10]   ;;  %s4681_s24 = scalar_lea.vmem %s293_s16, 16 }
   0x8   : > { %s5490_s18 = scalar_select %p4859_p3, 1, 0 }
   0x9   : > { %p4493_p4 = pneg %p4859_p3  ;;  %s324_s23 = sshll.u32 %s4785_s22, 4  ;;  %s4871_s23 = int_to_ptr.vmem [resolvable:$true] %s324_s23 }
   0xa   : > { %p4682_p6 = scmp.ne.s32.totalorder %s293_s16, %s4681_s24  ;;  %p4689_p10 = scmp.lt.s32.totalorder %s293_s16, %s293_s16 }
   0xb   : > { %p4867_p5 = pnand %p5488_p2, %p4493_p4  ;;  %p4690_p11 = scmp.lt.s32.totalorder %s4681_s24, %s4681_s24 }
   0xd   : > { %p4683_p7 = pneg %p4867_p5  ;;  %p4691_p12 = por %p4690_p11, %p4689_p10 }
   0xf   : > { %p4684_p8 = pnand %p4683_p7, %p4682_p6 }
  0x11   : > { %p4685_p9 = pneg %p4684_p8 }
  0x13   : > { %p4692_p13 = pnand %p4691_p12, %p4685_p9 }
  0x15   : > { %4695 = shalt.err (!%p4692_p13)
}
  0x16   : > { %s4786_s25 = smov [#allocation6]   ;;  %s4707_s26 = scalar_lea.vmem %s309_s20, 16384 }
  0x17   : > { %4496 = dma.vmem_to_smem (!%p4867_p5), %s293_s16, 16, %s4786_s25, [#allocation8]  }
  0x18   : > { %p4708_p0 = scmp.ne.s32.totalorder %s309_s20, %s4707_s26  ;;  %p4715_p2 = scmp.lt.s32.totalorder %s309_s20, %s309_s20 }
  0x19   : > { %p4716_p3 = scmp.lt.s32.totalorder %s4707_s26, %s4707_s26 }
  0x1a   : > { %p4710_p1 = pnand %p4708_p0, %p4683_p7 }
  0x1b   : > { %p4717_p6 = por %p4716_p3, %p4715_p2 }
  0x1c   : > { %p4711_p4 = pneg %p4710_p1 }
  0x1e   : > { %p4718_p8 = pnand %p4717_p6, %p4711_p4 }
  0x20   : > { %4721 = shalt.err (!%p4718_p8)
}
  0x21   : > { %s4787_s27 = smov 128   ;;  %s4788_s28 = smov 8  }
  0x22   : > { %4499 = dma.hbm_to_vmem [thread:$0]  (!%p4867_p5), %s5483_s6, 16384, %s309_s20, [#allocation7], %s4787_s27, %s4787_s27, %s4788_s28  }
  0x23   : > { %s4733_s11 = scalar_lea.vmem %s4871_s23, 4096  ;;  %p4741_p3 = scmp.lt.s32.totalorder %s4871_s23, %s4871_s23 }
  0x24   : > { %p4734_p9 = scmp.ne.s32.totalorder %s4871_s23, %s4733_s11  ;;  %p4742_p11 = scmp.lt.s32.totalorder %s4733_s11, %s4733_s11 }
  0x26   : > { %p4736_p10 = pnand %p4734_p9, %p4683_p7  ;;  %p4743_p12 = por %p4742_p11, %p4741_p3 }
  0x28   : > { %p4737_p2 = pneg %p4736_p10 }
  0x2a   : > { %p4744_p13 = pnand %p4743_p12, %p4737_p2 }
  0x2c   : > { %4747 = shalt.err (!%p4744_p13)
}
  0x2d   : > { %4502 = dma.hbm_to_vmem [thread:$0]  (!%p4867_p5), %s5485_s8, 4096, %s4871_s23, [#allocation11], %s4787_s27, %s4787_s27, %s4788_s28  }
  0x2e   : > { %p5492_p0 = scmp.ne.s32.totalorder %s5490_s18, 0 }
  0x2f   : > { %p5493_p1 = scmp.eq.s32.totalorder (!%p5492_p0), %s4854_s17, 0 }
  0x30   : > { %366 = sbr.rel (%p5492_p0) target bundleno = 1614 (0x64e), region = 60 }
  0x35   : > { %4761 = dma.done.wait (%p5493_p1), [#allocation8], 16   ;;  %p5494_p7 = pmov %p5493_p1 }
  0x36   : > { %p5495_p4 = pmov %p5493_p1 }
  0x37   : > { %4763 = vsyncadd (%p5494_p7), [#allocation8], 4294967280 }
  0x38   : > { %4765 = dma.done.wait (%p5495_p4), [#allocation7], 16384   ;;  %p5496_p6 = pmov %p5493_p1 }
  0x39   : > { %p5497_p8 = pmov %p5493_p1 }
  0x3a   : > { %4767 = vsyncadd (%p5496_p6), [#allocation7], 4294950912 }
  0x3b   : > { %4769 = dma.done.wait (%p5497_p8), [#allocation11], 4096   ;;  %p5498_p5 = pmov %p5493_p1 }
  0x3d   : > { %4771 = vsyncadd (%p5498_p5), [#allocation11], 4294963200 }
  0x3e   : > { %380 = sfence }
  0x3f   : > { %p422_p9 = scmp.lt.s32.totalorder %s4854_s17, 1  ;;  %vm447_vm0 = vcmask 261120   ;;  %v3860_v61 = vld [vmem:[%s5481_s4] ss:$0 sm:$0xff] }
  0x40   : > { %v3861_v63 = vld [vmem:[%s5482_s5] ss:$0 sm:$0xff] }
  0x41   : > { %s5500_s17 = smov (!%p422_p9, %s4854_s17), 1 }
  0x42   : > { %s4480_s15 = smul.u32 48, %s5500_s17  ;;  %s4052_s16 = sshll.u32 %s5500_s17, 4 }
  0x43   : > { %s4920_s20 = scalar_lea.vmem %s5478_s1, %s4052_s16  ;;  %s3858_s21 = sshll.u32 %s5500_s17, 2 }
  0x44   : > { %s426_s24 = scalar_lea.vmem %s5477_s0, %s4480_s15  ;;  %s4928_s27 = scalar_lea.vmem %s5479_s2, %s3858_s21 }
  0x45   : > { %s4933_s30 = scalar_lea.vmem %s5487_s10, %s4480_s15  ;;  %v441_v0 = vld [vmem:[%s426_s24] sm:$0xff]  ;;  %v443_v1 = vld [vmem:[%s426_s24 + $0x10] sm:$0xff]  ;;  %v442_v2 = vld [vmem:[%s426_s24 + $0x8] sm:$0xff]  ;;  %s4960_s15 = smov 0  }
  0x46   : > { %v448_v3 = vsel %vm447_vm0, %v441_v0, 0.0  ;;  %v454_v4 = vsel %vm447_vm0, %v443_v1, 0.0  ;;  %v444_v5 = vld [vmem:[%s426_s24 + $0x18] sm:$0xff]  ;;  %v451_v6 = vsel %vm447_vm0, %v442_v2, 0.0  ;;  %v445_v8 = vld [vmem:[%s426_s24 + $0x20] sm:$0xff]  ;;  %v446_v9 = vld [vmem:[%s426_s24 + $0x28] sm:$0xff] }
  0x47   : > { %449 = vadd.xlane.f32.xlu0 %v448_v3  ;;  %455 = vadd.xlane.f32.xlu1 %v454_v4  ;;  %v457_v7 = vsel %vm447_vm0, %v444_v5, 0.0  ;;  %v460_v10 = vsel %vm447_vm0, %v445_v8, 0.0  ;;  %v463_v11 = vsel %vm447_vm0, %v446_v9, 0.0 }
  0x4b   : > { %452 = vadd.xlane.f32.xlu0 %v451_v6  ;;  %458 = vadd.xlane.f32.xlu1 %v457_v7 }
  0x4f   : > { %461 = vadd.xlane.f32.xlu0 %v460_v10  ;;  %464 = vadd.xlane.f32.xlu1 %v463_v11 }
  0xd0   : > { %v450_v12 = vpop.xlane.xlu0 %449  ;;  %v456_v13 = vpop.xlane.xlu1 %455 }
  0xd1   : > { %v467_v14 = vmul.f32 0.03125, %v450_v12  ;;  %v469_v15 = vmul.f32 0.03125, %v456_v13 }
  0xd3   : > { %v473_v16 = vsub.f32 %v441_v0, %v467_v14  ;;  %v4941_v17 = vsub.f32 %v443_v1, %v469_v15 }
  0xd4   : > { %v453_v18 = vpop.xlane.xlu0 %452  ;;  %v459_v19 = vpop.xlane.xlu1 %458 }
  0xd5   : > { %v468_v20 = vmul.f32 0.03125, %v453_v18  ;;  %v470_v21 = vmul.f32 0.03125, %v459_v19  ;;  %v479_v22 = vmul.f32 %v473_v16, %v473_v16  ;;  %v481_v23 = vmul.f32 %v4941_v17, %v4941_v17 }
  0xd7   : > { %v474_v24 = vsub.f32 %v442_v2, %v468_v20  ;;  %v476_v25 = vsub.f32 %v444_v5, %v470_v21  ;;  %v485_v26 = vsel %vm447_vm0, %v479_v22, 0.0  ;;  %v491_v29 = vsel %vm447_vm0, %v481_v23, 0.0 }
  0xd8   : > { %486 = vadd.xlane.f32.xlu0 %v485_v26  ;;  %v462_v27 = vpop.xlane.xlu0 %461  ;;  %v465_v28 = vpop.xlane.xlu1 %464 }
  0xd9   : > { %v471_v30 = vmul.f32 0.03125, %v462_v27  ;;  %v472_v31 = vmul.f32 0.03125, %v465_v28  ;;  %v480_v32 = vmul.f32 %v474_v24, %v474_v24  ;;  %v482_v33 = vmul.f32 %v476_v25, %v476_v25 }
  0xdb   : > { %v477_v34 = vsub.f32 %v445_v8, %v471_v30  ;;  %v478_v35 = vsub.f32 %v446_v9, %v472_v31  ;;  %v488_v36 = vsel %vm447_vm0, %v480_v32, 0.0  ;;  %v494_v37 = vsel %vm447_vm0, %v482_v33, 0.0 }
  0xdc   : > { %492 = vadd.xlane.f32.xlu0 %v491_v29  ;;  %489 = vadd.xlane.f32.xlu1 %v488_v36 }
  0xdd   : > { %v483_v38 = vmul.f32 %v477_v34, %v477_v34  ;;  %v484_v39 = vmul.f32 %v478_v35, %v478_v35 }
  0xdf   : > { %v497_v40 = vsel %vm447_vm0, %v483_v38, 0.0  ;;  %v500_v41 = vsel %vm447_vm0, %v484_v39, 0.0 }
  0xe0   : > { %495 = vadd.xlane.f32.xlu1 %v494_v37  ;;  %498 = vadd.xlane.f32.xlu0 %v497_v40 }
  0xe4   : > { %501 = vadd.xlane.f32.xlu1 %v500_v41 }
 0x161   : > { %v487_v42 = vpop.xlane.xlu0 %486 }
 0x162   : > { %v503_v43 = vmul.f32 0.03125, %v487_v42 }
 0x164   : > { %v509_v44 = vadd.f32 1e-05, %v503_v43 }
 0x165   : > { %v490_v45 = vpop.xlane.xlu1 %489  ;;  %v493_v46 = vpop.xlane.xlu0 %492 }
 0x166   : > { %4539 = vrsqrt.f32 %v509_v44  ;;  %v504_v47 = vmul.f32 0.03125, %v490_v45  ;;  %v505_v48 = vmul.f32 0.03125, %v493_v46 }
 0x168   : > { %v510_v49 = vadd.f32 1e-05, %v504_v47  ;;  %v511_v50 = vadd.f32 1e-05, %v505_v48 }
 0x169   : > { %v496_v51 = vpop.xlane.xlu1 %495  ;;  %v499_v52 = vpop.xlane.xlu0 %498 }
 0x16a   : > { %4541 = vrsqrt.f32 %v510_v49  ;;  %v506_v53 = vmul.f32 0.03125, %v496_v51  ;;  %v507_v54 = vmul.f32 0.03125, %v499_v52 }
 0x16b   : > { %4543 = vrsqrt.f32 %v511_v50 }
 0x16c   : > { %v512_v55 = vadd.f32 1e-05, %v506_v53  ;;  %v513_v56 = vadd.f32 1e-05, %v507_v54 }
 0x16d   : > { %v502_v57 = vpop.xlane.xlu1 %501 }
 0x16e   : > { %4545 = vrsqrt.f32 %v512_v55  ;;  %v508_v58 = vmul.f32 0.03125, %v502_v57 }
 0x16f   : > { %4547 = vrsqrt.f32 %v513_v56 }
 0x170   : > { %v514_v59 = vadd.f32 1e-05, %v508_v58 }
 0x172   : > { %4549 = vrsqrt.f32 %v514_v59 }
 0x173   : > { %v4540_v60 = vpop.eup %4539 }
 0x174   : > { %v521_v62 = vmul.f32 %v4540_v60, %v473_v16 }
 0x176   : > { %v534_v0 = vmul.f32 %v3860_v61, %v521_v62 }
 0x177   : > { %v4542_v1 = vpop.eup %4541 }
 0x178   : > { %v4544_v2 = vpop.eup %4543  ;;  %v4957_v3 = vadd.f32 %v3861_v63, %v534_v0  ;;  %v522_v4 = vmul.f32 %v4542_v1, %v474_v24 }
 0x179   : > { %v523_v5 = vmul.f32 %v4544_v2, %v4941_v17 }
 0x17a   : > { %v535_v6 = vmul.f32 %v3860_v61, %v522_v4 }
 0x17b   : > { %v4546_v7 = vpop.eup %4545  ;;  %v536_v8 = vmul.f32 %v3860_v61, %v523_v5 }
 0x17c   : > { %v4548_v9 = vpop.eup %4547  ;;  %v548_v10 = vadd.f32 %v3861_v63, %v535_v6  ;;  %v524_v11 = vmul.f32 %v4546_v7, %v476_v25 }
 0x17d   : > { %v549_v12 = vadd.f32 %v3861_v63, %v536_v8  ;;  %v525_v13 = vmul.f32 %v4548_v9, %v477_v34 }
 0x17e   : > { %v537_v14 = vmul.f32 %v3860_v61, %v524_v11 }
 0x17f   : > { %v4550_v15 = vpop.eup %4549  ;;  %v538_v16 = vmul.f32 %v3860_v61, %v525_v13 }
 0x180   : > { %v550_v18 = vadd.f32 %v3861_v63, %v537_v14  ;;  %v526_v19 = vmul.f32 %v4550_v15, %v478_v35 }
 0x181   : > { %v551_v20 = vadd.f32 %v3861_v63, %v538_v16 }
 0x182   : > { %v539_v21 = vmul.f32 %v3860_v61, %v526_v19 }
 0x184   : > { %v552_v22 = vadd.f32 %v3861_v63, %v539_v21 }
 0x185 LB: >> { %4218 = vmatprep.mubr.msk.f32.mxu1 %vm447_vm0, %v549_v12  ;;  %4215 = vmatprep.mubr.msk.f32.mxu0 %vm447_vm0, %v4957_v3  ;;  %s3862_s16 = sshll.u32 %s4778_s15, 5  ;;  %s678_s19 = smul.u32 48, %s4778_s15  ;;  %s4778_s15 = sphi %s4960_s15, %s558_s15  }
 0x186   : >> { %s560_s18 = scalar_lea.vmem [#allocation9], %s3862_s16  ;;  %s558_s15 = sadd.s32 1, %s4778_s15  }
 0x187   : >> { %v564_v17 = vld [vmem:[%s560_s18 + $0x18] sm:$0xff]  ;;  %v563_v23 = vld [vmem:[%s560_s18 + $0x10] sm:$0xff]  ;;  %v562_v24 = vld [vmem:[%s560_s18 + $0x8] sm:$0xff]  ;;  %s679_s21 = scalar_lea.vmem [#allocation2], %s678_s19  ;;  %p555_p10 = scmp.ge.s32.totalorder %s558_s15, 32  }
 0x188   : >> { %4472 = vmatprep.subr.mxu1 %v564_v17  ;;  %4207 = vmatprep.subr.mxu0 %v564_v17  ;;  %v561_v25 = vld [vmem:[%s560_s18] sm:$0xff]  ;;  %s688_s22 = sld [smem:[#allocation6]] (%p555_p10)  ;;  %v744_v32 = vlaneseq (%p555_p10)  ;;  %v687_v36 = vld [vmem:[%s4920_s20 + $0x8] sm:$0xff] (%p555_p10)  ;;  %vm692_vm1 = vcmask (%p555_p10), 130048  }
 0x189   : >> { %4476 = vmatpush3.msra.mxu1 %v564_v17  ;;  %4208 = vmatpush3.msra.mxu0 %v564_v17  ;;  %s3869_s23 = sld [smem:[#allocation6 + $0x1]] (%p555_p10)  ;;  %v686_v35 = vld [vmem:[%s4920_s20] sm:$0xff] (%p555_p10)  ;;  %s5014_s20 = smov (%p555_p10), 0  }
 0x18a   : >> { %4473 = vmatprep.subr.mxu1 %v563_v23  ;;  %4209 = vmatprep.subr.mxu0 %v563_v23  ;;  %s3870_s24 = sld [smem:[#allocation6 + $0x2]] (%p555_p10)  ;;  %v4983_v33 = vshrl.u32 (%p555_p10), %v744_v32, 7  ;;  %v4985_v34 = vand.u32 (%p555_p10), 127, %v744_v32 }
 0x18b   : >> { %4477 = vmatpush3.msra.mxu1 %v563_v23  ;;  %4210 = vmatpush3.msra.mxu0 %v563_v23  ;;  %s3871_s25 = sld [smem:[#allocation6 + $0x3]] (%p555_p10) }
 0x18c   : >> { %4474 = vmatprep.subr.mxu1 %v562_v24  ;;  %4211 = vmatprep.subr.mxu0 %v562_v24  ;;  %s3872_s26 = sld [smem:[#allocation6 + $0x4]] (%p555_p10)  ;;  %v4990_v37 = vadd.s32 (%p555_p10), 8, %v4983_v33 }
 0x18d   : >> { %4478 = vmatpush3.msra.mxu1 %v562_v24  ;;  %4212 = vmatpush3.msra.mxu0 %v562_v24  ;;  %s3873_s28 = sld [smem:[#allocation6 + $0x5]] (%p555_p10) }
 0x18e   : >> { %4475 = vmatprep.subr.mxu1 %v561_v25  ;;  %4213 = vmatprep.subr.mxu0 %v561_v25  ;;  %v689_v38 = vstv (%p555_p10), %s688_s22  ;;  %s4992_s29 = sld [smem:[#allocation6 + $0x6]] (%p555_p10) }
 0x18f   : >> { %4479 = vmatpush3.msra.mxu1 %v561_v25  ;;  %4214 = vmatpush3.msra.mxu0 %v561_v25  ;;  %v690_v39 = vmul.f32 (%p555_p10), %v689_v38, %v686_v35  ;;  %v691_v40 = vmul.f32 (%p555_p10), %v689_v38, %v687_v36  ;;  %v696_v41 = vstv (%p555_p10), %s3869_s23  ;;  %s4994_s17 = sld [smem:[#allocation6 + $0x7]] (%p555_p10) }
 0x190   : >> { %4219 = vmatmul.mubr.msk.f32.vlgmr.msra.gmra.mxu1 %vm447_vm0, %v550_v18  ;;  %4216 = vmatmul.mubr.msk.f32.vlgmr.msra.gmra.mxu0 %vm447_vm0, %v548_v10  ;;  %v697_v42 = vmul.f32 (%p555_p10), %v696_v41, %v686_v35  ;;  %v698_v43 = vmul.f32 (%p555_p10), %v696_v41, %v687_v36  ;;  %v703_v44 = vstv (%p555_p10), %s3870_s24 }
 0x191   : >> { %4221 = vmatprep.mubr.msk.f32.mxu1 %vm447_vm0, %v551_v20  ;;  %693 = vst.msk [vmem:[#allocation4] sm:$0xff] (%p555_p10), %vm692_vm1, %v690_v39  ;;  %694 = vst.msk [vmem:[#allocation4 + $0x8] sm:$0xff] (%p555_p10), %vm692_vm1, %v691_v40  ;;  %v704_v45 = vmul.f32 (%p555_p10), %v703_v44, %v686_v35  ;;  %v705_v46 = vmul.f32 (%p555_p10), %v703_v44, %v687_v36  ;;  %v710_v47 = vstv (%p555_p10), %s3871_s25 }
 0x192   : > { %700 = vst.msk [vmem:[#allocation4 + $0x10] sm:$0xff] (%p555_p10), %vm692_vm1, %v697_v42  ;;  %701 = vst.msk [vmem:[#allocation4 + $0x18] sm:$0xff] (%p555_p10), %vm692_vm1, %v698_v43  ;;  %v711_v48 = vmul.f32 (%p555_p10), %v710_v47, %v686_v35  ;;  %v712_v49 = vmul.f32 (%p555_p10), %v710_v47, %v687_v36  ;;  %v717_v50 = vstv (%p555_p10), %s3872_s26 }
 0x193   : > { %707 = vst.msk [vmem:[#allocation4 + $0x20] sm:$0xff] (%p555_p10), %vm692_vm1, %v704_v45  ;;  %708 = vst.msk [vmem:[#allocation4 + $0x28] sm:$0xff] (%p555_p10), %vm692_vm1, %v705_v46  ;;  %v718_v51 = vmul.f32 (%p555_p10), %v717_v50, %v686_v35  ;;  %v719_v52 = vmul.f32 (%p555_p10), %v717_v50, %v687_v36  ;;  %v724_v53 = vstv (%p555_p10), %s3873_s28 }
 0x194   : >> { %4222 = vmatmul.mubr.msk.f32.gmra.mxu1 %vm447_vm0, %v552_v22  ;;  %714 = vst.msk [vmem:[#allocation4 + $0x30] sm:$0xff] (%p555_p10), %vm692_vm1, %v711_v48  ;;  %715 = vst.msk [vmem:[#allocation4 + $0x38] sm:$0xff] (%p555_p10), %vm692_vm1, %v712_v49  ;;  %v725_v54 = vmul.f32 (%p555_p10), %v724_v53, %v686_v35  ;;  %v726_v55 = vmul.f32 (%p555_p10), %v724_v53, %v687_v36  ;;  %v731_v56 = vstv (%p555_p10), %s4992_s29 }
 0x195   : > { %721 = vst.msk [vmem:[#allocation4 + $0x40] sm:$0xff] (%p555_p10), %vm692_vm1, %v718_v51  ;;  %722 = vst.msk [vmem:[#allocation4 + $0x48] sm:$0xff] (%p555_p10), %vm692_vm1, %v719_v52  ;;  %v732_v57 = vmul.f32 (%p555_p10), %v731_v56, %v686_v35  ;;  %v733_v58 = vmul.f32 (%p555_p10), %v731_v56, %v687_v36  ;;  %v738_v59 = vstv (%p555_p10), %s4994_s17 }
 0x196   : > { %728 = vst.msk [vmem:[#allocation4 + $0x50] sm:$0xff] (%p555_p10), %vm692_vm1, %v725_v54  ;;  %729 = vst.msk [vmem:[#allocation4 + $0x58] sm:$0xff] (%p555_p10), %vm692_vm1, %v726_v55  ;;  %v739_v60 = vmul.f32 (%p555_p10), %v738_v59, %v686_v35  ;;  %v740_v61 = vmul.f32 (%p555_p10), %v738_v59, %v687_v36 }
 0x197   : > { %735 = vst.msk [vmem:[#allocation4 + $0x60] sm:$0xff] (%p555_p10), %vm692_vm1, %v732_v57  ;;  %736 = vst.msk [vmem:[#allocation4 + $0x68] sm:$0xff] (%p555_p10), %vm692_vm1, %v733_v58 }
 0x198   : > { %742 = vst.msk [vmem:[#allocation4 + $0x70] sm:$0xff] (%p555_p10), %vm692_vm1, %v739_v60  ;;  %743 = vst.msk [vmem:[#allocation4 + $0x78] sm:$0xff] (%p555_p10), %vm692_vm1, %v740_v61 }
 0x250   : >> { %v4220_v26 = vpop.f32.mrf.mxu1  ;;  %v4217_v27 = vpop.f32.mrf.mxu0 }
 0x251   : >> { %683 = vst.msk [vmem:[%s679_s21 + $0x18] sm:$0xff] %vm447_vm0, %v4220_v26  ;;  %681 = vst.msk [vmem:[%s679_s21 + $0x8] sm:$0xff] %vm447_vm0, %v4217_v27 }
 0x252   : >> { %v659_v28 = vpop.f32.mrf.mxu1  ;;  %v649_v29 = vpop.f32.mrf.mxu0 }
 0x253   : >> { %682 = vst.msk [vmem:[%s679_s21 + $0x10] sm:$0xff] %vm447_vm0, %v659_v28  ;;  %680 = vst.msk [vmem:[%s679_s21] sm:$0xff] %vm447_vm0, %v649_v29  ;;  %557 = sbr.rel (!%p555_p10) target bundleno = 389 (0x185), region = 154 }
 0x254   : >> { %v4223_v30 = vpop.f32.mrf.mxu1 }
 0x255   : >> { %685 = vst.msk [vmem:[%s679_s21 + $0x28] sm:$0xff] %vm447_vm0, %v4223_v30 }
 0x256   : >> { %v669_v31 = vpop.f32.mrf.mxu1 }
 0x257   : >> { %684 = vst.msk [vmem:[%s679_s21 + $0x20] sm:$0xff] %vm447_vm0, %v669_v31 }
 0x258 LB: >> { %s5020_s11 = sshll.u32 %s4782_s20, 4  ;;  %s756_s14 = scalar_lea.vmem %s4928_s27, %s4782_s20  ;;  %v1713_v35 = vsub.s32 0, %v4983_v33  ;;  %v1000_v36 = vld [vmem:[#allocation4 + $0x8] sm:$0xff]  ;;  %v1002_v38 = vld [vmem:[#allocation4 + $0x18] sm:$0xff]  ;;  %v999_v42 = vld [vmem:[#allocation4] sm:$0xff]  ;;  %vm2589_vm2 = vcmp.eq.s32.totalorder %v4990_v37, %v4985_v34  ;;  %vm2588_vm3 = vcmp.eq.s32.totalorder %v4983_v33, %v4985_v34  ;;  %vm2603_vm4 = vcmask 7168   ;;  %s4782_s20 = sphi %s5014_s20, %s754_s20  }
 0x259   : >> { %s5023_s12 = scalar_lea.vmem [#allocation2], %s5020_s11  ;;  %v5107_v30 = vld [vmem:[%s756_s14] sm:$0x1]  ;;  %v1001_v43 = vld [vmem:[#allocation4 + $0x10] sm:$0xff]  ;;  %v1006_v54 = vld [vmem:[#allocation4 + $0x38] sm:$0xff]  ;;  %s2602_s15 = scalar_lea.vmem [#allocation5], %s5020_s11 }
 0x25a   : >> { %v3877_v31 = vadd.f32 -1.0, %v5107_v30  ;;  %v1004_v55 = vld [vmem:[#allocation4 + $0x28] sm:$0xff]  ;;  %v1003_v61 = vld [vmem:[#allocation4 + $0x20] sm:$0xff]  ;;  %s754_s20 = sadd.s32 1, %s4782_s20  }
 0x25b   : >> { %p751_p2 = scmp.ge.s32.totalorder %s754_s20, 3  }
 0x25c   : >> { %v759_v32 = vmul.f32 1e+09, %v3877_v31 }
 0x25e   : >> { %v3880_v62 = vld [vmem:[%s5023_s12 + $0x188] sm:$0xff]  ;;  %v3882_v63 = vld [vmem:[%s5023_s12 + $0x1b8] sm:$0xff]  ;;  %v3879_v0 = vld [vmem:[%s5023_s12 + $0x180] sm:$0xff]  ;;  %v5113_v39 = vrot.slane %v759_v32, %v1713_v35 }
 0x25f   : >> { %4224 = vmatprep.subr.msk.mxu0 %vm447_vm0, %v3880_v62  ;;  %4231 = vmatprep.subr.msk.mxu1 %vm447_vm0, %v3882_v63  ;;  %v3881_v1 = vld [vmem:[%s5023_s12 + $0x1b0] sm:$0xff]  ;;  %v761_v2 = vld [vmem:[%s5023_s12] sm:$0xff]  ;;  %v3884_v4 = vld [vmem:[%s5023_s12 + $0x1e8] sm:$0xff] }
 0x260   : >> { %4225 = vmatpush3.xpose.msk.msra.mxu0 %vm447_vm0, %v3880_v62  ;;  %4232 = vmatpush3.xpose.msk.msra.mxu1 %vm447_vm0, %v3882_v63  ;;  %v763_v3 = vld [vmem:[%s5023_s12 + $0x30] sm:$0xff]  ;;  %v3886_v5 = vld [vmem:[%s5023_s12 + $0x218] sm:$0xff]  ;;  %v762_v6 = vld [vmem:[%s5023_s12 + $0x8] sm:$0xff] }
 0x261   : >> { %4226 = vmatprep.subr.msk.mxu0 %vm447_vm0, %v3879_v0  ;;  %4233 = vmatprep.subr.msk.mxu1 %vm447_vm0, %v3881_v1  ;;  %v764_v7 = vld [vmem:[%s5023_s12 + $0x38] sm:$0xff]  ;;  %v3883_v8 = vld [vmem:[%s5023_s12 + $0x1e0] sm:$0xff]  ;;  %v3885_v9 = vld [vmem:[%s5023_s12 + $0x210] sm:$0xff] }
 0x262   : >> { %4228 = vmatprep.mubr.msk.f32.mxu0 %vm447_vm0, %v761_v2  ;;  %4235 = vmatprep.mubr.msk.f32.mxu1 %vm447_vm0, %v763_v3  ;;  %v767_v10 = vld [vmem:[%s5023_s12 + $0x90] sm:$0xff]  ;;  %v765_v11 = vld [vmem:[%s5023_s12 + $0x60] sm:$0xff]  ;;  %v3888_v12 = vld [vmem:[%s5023_s12 + $0x248] sm:$0xff] }
 0x263   : >> { %v3890_v13 = vld [vmem:[%s5023_s12 + $0x278] sm:$0xff]  ;;  %v766_v15 = vld [vmem:[%s5023_s12 + $0x68] sm:$0xff]  ;;  %v3887_v16 = vld [vmem:[%s5023_s12 + $0x240] sm:$0xff] }
 0x264   : >> { %4227 = vmatpush3.xpose.msk.msra.mxu0 %vm447_vm0, %v3879_v0  ;;  %4234 = vmatpush3.xpose.msk.msra.mxu1 %vm447_vm0, %v3881_v1  ;;  %v768_v14 = vld [vmem:[%s5023_s12 + $0x98] sm:$0xff]  ;;  %v3889_v18 = vld [vmem:[%s5023_s12 + $0x270] sm:$0xff]  ;;  %v769_v20 = vld [vmem:[%s5023_s12 + $0xc0] sm:$0xff] }
 0x265   : >> { %4238 = vmatprep.subr.msk.mxu0 %vm447_vm0, %v3884_v4  ;;  %4245 = vmatprep.subr.msk.mxu1 %vm447_vm0, %v3886_v5  ;;  %v771_v19 = vld [vmem:[%s5023_s12 + $0xf0] sm:$0xff]  ;;  %v3892_v21 = vld [vmem:[%s5023_s12 + $0x2a8] sm:$0xff]  ;;  %v3894_v22 = vld [vmem:[%s5023_s12 + $0x2d8] sm:$0xff] }
 0x266   : >> { %v772_v17 = vld [vmem:[%s5023_s12 + $0xf8] sm:$0xff]  ;;  %v770_v23 = vld [vmem:[%s5023_s12 + $0xc8] sm:$0xff]  ;;  %v3891_v24 = vld [vmem:[%s5023_s12 + $0x2a0] sm:$0xff] }
 0x267   : >> { %4229 = vmatmul.mubr.msk.f32.vlgmr.msra.gmra.mxu0 %vm447_vm0, %v762_v6  ;;  %4236 = vmatmul.mubr.msk.f32.vlgmr.msra.gmra.mxu1 %vm447_vm0, %v764_v7  ;;  %v3893_v25 = vld [vmem:[%s5023_s12 + $0x2d0] sm:$0xff]  ;;  %v773_v26 = vld [vmem:[%s5023_s12 + $0x120] sm:$0xff]  ;;  %v774_v28 = vld [vmem:[%s5023_s12 + $0x128] sm:$0xff] }
 0x268   : >> { %4239 = vmatpush3.xpose.msk.msra.mxu0 %vm447_vm0, %v3884_v4  ;;  %4246 = vmatpush3.xpose.msk.msra.mxu1 %vm447_vm0, %v3886_v5  ;;  %v775_v27 = vld [vmem:[%s5023_s12 + $0x150] sm:$0xff]  ;;  %v776_v29 = vld [vmem:[%s5023_s12 + $0x158] sm:$0xff] }
 0x269   : >> { %4240 = vmatprep.subr.msk.mxu0 %vm447_vm0, %v3883_v8  ;;  %4247 = vmatprep.subr.msk.mxu1 %vm447_vm0, %v3885_v9  ;;  %v1005_v62 = vld [vmem:[#allocation4 + $0x30] sm:$0xff] }
 0x26a   : >> { %4249 = vmatprep.mubr.msk.f32.mxu1 %vm447_vm0, %v767_v10  ;;  %4242 = vmatprep.mubr.msk.f32.mxu0 %vm447_vm0, %v765_v11  ;;  %v1010_v11 = vld [vmem:[#allocation4 + $0x58] sm:$0xff] }
 0x26c   : >> { %4241 = vmatpush3.xpose.msk.msra.mxu0 %vm447_vm0, %v3883_v8  ;;  %4248 = vmatpush3.xpose.msk.msra.mxu1 %vm447_vm0, %v3885_v9 }
 0x26d   : >> { %4252 = vmatprep.subr.msk.mxu0 %vm447_vm0, %v3888_v12  ;;  %4259 = vmatprep.subr.msk.mxu1 %vm447_vm0, %v3890_v13 }
 0x26f   : >> { %4250 = vmatmul.mubr.msk.f32.vlgmr.msra.gmra.mxu1 %vm447_vm0, %v768_v14  ;;  %4243 = vmatmul.mubr.msk.f32.vlgmr.msra.gmra.mxu0 %vm447_vm0, %v766_v15 }
 0x270   : >> { %4253 = vmatpush3.xpose.msk.msra.mxu0 %vm447_vm0, %v3888_v12  ;;  %4260 = vmatpush3.xpose.msk.msra.mxu1 %vm447_vm0, %v3890_v13  ;;  %v1008_v12 = vld [vmem:[#allocation4 + $0x48] sm:$0xff] }
 0x271   : >> { %4254 = vmatprep.subr.msk.mxu0 %vm447_vm0, %v3887_v16  ;;  %4261 = vmatprep.subr.msk.mxu1 %vm447_vm0, %v3889_v18 }
 0x272   : >> { %4263 = vmatprep.mubr.msk.f32.mxu1 %vm447_vm0, %v771_v19  ;;  %4256 = vmatprep.mubr.msk.f32.mxu0 %vm447_vm0, %v769_v20  ;;  %v1009_v19 = vld [vmem:[#allocation4 + $0x50] sm:$0xff] }
 0x274   : >> { %4255 = vmatpush3.xpose.msk.msra.mxu0 %vm447_vm0, %v3887_v16  ;;  %4262 = vmatpush3.xpose.msk.msra.mxu1 %vm447_vm0, %v3889_v18  ;;  %v1007_v18 = vld [vmem:[#allocation4 + $0x40] sm:$0xff] }
 0x275   : >> { %4266 = vmatprep.subr.msk.mxu0 %vm447_vm0, %v3892_v21  ;;  %4273 = vmatprep.subr.msk.mxu1 %vm447_vm0, %v3894_v22 }
 0x277   : >> { %4264 = vmatmul.mubr.msk.f32.vlgmr.msra.gmra.mxu1 %vm447_vm0, %v772_v17  ;;  %4257 = vmatmul.mubr.msk.f32.vlgmr.msra.gmra.mxu0 %vm447_vm0, %v770_v23 }
 0x278   : >> { %4267 = vmatpush3.xpose.msk.msra.mxu0 %vm447_vm0, %v3892_v21  ;;  %4274 = vmatpush3.xpose.msk.msra.mxu1 %vm447_vm0, %v3894_v22 }
 0x279   : >> { %4268 = vmatprep.subr.msk.mxu0 %vm447_vm0, %v3891_v24  ;;  %4275 = vmatprep.subr.msk.mxu1 %vm447_vm0, %v3893_v25 }
 0x27a   : >> { %4270 = vmatprep.mubr.msk.f32.mxu0 %vm447_vm0, %v773_v26  ;;  %4277 = vmatprep.mubr.msk.f32.mxu1 %vm447_vm0, %v775_v27 }
 0x27c   : >> { %4269 = vmatpush3.xpose.msk.msra.mxu0 %vm447_vm0, %v3891_v24  ;;  %4276 = vmatpush3.xpose.msk.msra.mxu1 %vm447_vm0, %v3893_v25 }
 0x27f   : >> { %4271 = vmatmul.mubr.msk.f32.vlgmr.msra.gmra.mxu0 %vm447_vm0, %v774_v28  ;;  %4278 = vmatmul.mubr.msk.f32.vlgmr.msra.gmra.mxu1 %vm447_vm0, %v776_v29 }
 0x327   : >> { %v4230_v40 = vpop.f32.mrf.mxu0  ;;  %v4237_v41 = vpop.f32.mrf.mxu1 }
 0x328   : >> { %v1099_v44 = vadd.f32 %v4230_v40, %v1000_v36  ;;  %v1186_v45 = vadd.f32 %v4237_v41, %v1002_v38  ;;  %v1012_v36 = vld [vmem:[#allocation4 + $0x68] sm:$0xff]  ;;  %v1014_v41 = vld [vmem:[#allocation4 + $0x78] sm:$0xff] }
 0x329   : >> { %v1093_v46 = vpop.f32.mrf.mxu0  ;;  %v1180_v47 = vpop.f32.mrf.mxu1 }
 0x32a   : >> { %v1094_v48 = vadd.f32 %v1093_v46, %v999_v42  ;;  %v1181_v49 = vadd.f32 %v1180_v47, %v1001_v43  ;;  %v5116_v50 = vadd.f32 %v5113_v39, %v1099_v44  ;;  %v5119_v51 = vadd.f32 %v5113_v39, %v1186_v45  ;;  %v1013_v43 = vld [vmem:[#allocation4 + $0x70] sm:$0xff]  ;;  %v1011_v44 = vld [vmem:[#allocation4 + $0x60] sm:$0xff] }
 0x32c   : >> { %v1734_v52 = vsel %vm692_vm1, %v5116_v50, -inf  ;;  %v5124_v53 = vadd.f32 %v5113_v39, %v1094_v48  ;;  %v5127_v56 = vadd.f32 %v5113_v39, %v1181_v49  ;;  %v1740_v58 = vsel %vm692_vm1, %v5119_v51, -inf }
 0x32d   : >> { %1735 = vmax.xlane.f32.xlu1 %v1734_v52 }
 0x32e   : >> { %v1731_v57 = vsel %vm692_vm1, %v5124_v53, -inf  ;;  %v1737_v3 = vsel %vm692_vm1, %v5127_v56, -inf }
 0x32f   : >> { %v4251_v59 = vpop.f32.mrf.mxu1  ;;  %1732 = vmax.xlane.f32.xlu0 %v1731_v57  ;;  %v4244_v60 = vpop.f32.mrf.mxu0 }
 0x330   : >> { %v1360_v63 = vadd.f32 %v4251_v59, %v1006_v54  ;;  %v1273_v0 = vadd.f32 %v4244_v60, %v1004_v55 }
 0x331   : >> { %1741 = vmax.xlane.f32.xlu1 %v1740_v58  ;;  %v1267_v1 = vpop.f32.mrf.mxu0  ;;  %v1354_v2 = vpop.f32.mrf.mxu1 }
 0x332   : >> { %v1268_v4 = vadd.f32 %v1267_v1, %v1003_v61  ;;  %v1355_v5 = vadd.f32 %v1354_v2, %v1005_v62  ;;  %v5136_v6 = vadd.f32 %v5113_v39, %v1360_v63  ;;  %v5139_v7 = vadd.f32 %v5113_v39, %v1273_v0 }
 0x333   : >> { %1738 = vmax.xlane.f32.xlu0 %v1737_v3 }
 0x334   : >> { %v1752_v8 = vsel %vm692_vm1, %v5136_v6, -inf  ;;  %v1746_v9 = vsel %vm692_vm1, %v5139_v7, -inf  ;;  %v5146_v10 = vadd.f32 %v5113_v39, %v1355_v5  ;;  %v5149_v13 = vadd.f32 %v5113_v39, %v1268_v4 }
 0x335   : >> { %1753 = vmax.xlane.f32.xlu1 %v1752_v8 }
 0x336   : >> { %v1749_v14 = vsel %vm692_vm1, %v5146_v10, -inf  ;;  %v1743_v23 = vsel %vm692_vm1, %v5149_v13, -inf }
 0x337   : >> { %v4265_v15 = vpop.f32.mrf.mxu1  ;;  %1747 = vmax.xlane.f32.xlu0 %v1746_v9  ;;  %v4258_v16 = vpop.f32.mrf.mxu0 }
 0x338   : >> { %v1534_v20 = vadd.f32 %v4265_v15, %v1010_v11  ;;  %v1447_v21 = vadd.f32 %v4258_v16, %v1008_v12 }
 0x339   : >> { %1750 = vmax.xlane.f32.xlu1 %v1749_v14  ;;  %v1441_v22 = vpop.f32.mrf.mxu0  ;;  %v1528_v17 = vpop.f32.mrf.mxu1 }
 0x33a   : >> { %v1442_v24 = vadd.f32 %v1441_v22, %v1007_v18  ;;  %v1529_v25 = vadd.f32 %v1528_v17, %v1009_v19  ;;  %v5156_v26 = vadd.f32 %v5113_v39, %v1534_v20  ;;  %v5159_v27 = vadd.f32 %v5113_v39, %v1447_v21 }
 0x33b   : >> { %1744 = vmax.xlane.f32.xlu0 %v1743_v23 }
 0x33c   : >> { %v1764_v28 = vsel %vm692_vm1, %v5156_v26, -inf  ;;  %v1758_v29 = vsel %vm692_vm1, %v5159_v27, -inf  ;;  %v5166_v31 = vadd.f32 %v5113_v39, %v1529_v25  ;;  %v5169_v32 = vadd.f32 %v5113_v39, %v1442_v24 }
 0x33d   : >> { %1765 = vmax.xlane.f32.xlu1 %v1764_v28 }
 0x33e   : >> { %v1761_v38 = vsel %vm692_vm1, %v5166_v31, -inf  ;;  %v1755_v47 = vsel %vm692_vm1, %v5169_v32, -inf }
 0x33f   : >> { %v4272_v40 = vpop.f32.mrf.mxu0  ;;  %v4279_v42 = vpop.f32.mrf.mxu1  ;;  %1759 = vmax.xlane.f32.xlu0 %v1758_v29 }
 0x340   : >> { %v1621_v48 = vadd.f32 %v4272_v40, %v1012_v36  ;;  %v1708_v49 = vadd.f32 %v4279_v42, %v1014_v41 }
 0x341   : >> { %v1702_v45 = vpop.f32.mrf.mxu1  ;;  %1762 = vmax.xlane.f32.xlu1 %v1761_v38  ;;  %v1615_v46 = vpop.f32.mrf.mxu0 }
 0x342   : >> { %v1703_v52 = vadd.f32 %v1702_v45, %v1013_v43  ;;  %v1616_v54 = vadd.f32 %v1615_v46, %v1011_v44  ;;  %v5186_v60 = vadd.f32 %v5113_v39, %v1708_v49  ;;  %v5189_v61 = vadd.f32 %v5113_v39, %v1621_v48 }
 0x343   : >> { %1756 = vmax.xlane.f32.xlu0 %v1755_v47 }
 0x344   : >> { %v5176_v55 = vadd.f32 %v5113_v39, %v1703_v52  ;;  %v5179_v57 = vadd.f32 %v5113_v39, %v1616_v54  ;;  %v1776_v62 = vsel %vm692_vm1, %v5186_v60, -inf  ;;  %v1770_v63 = vsel %vm692_vm1, %v5189_v61, -inf }
 0x346   : >> { %v1773_v58 = vsel %vm692_vm1, %v5176_v55, -inf  ;;  %v1767_v59 = vsel %vm692_vm1, %v5179_v57, -inf }
 0x347   : >> { %1774 = vmax.xlane.f32.xlu1 %v1773_v58  ;;  %1768 = vmax.xlane.f32.xlu0 %v1767_v59 }
 0x34b   : >> { %1777 = vmax.xlane.f32.xlu1 %v1776_v62  ;;  %1771 = vmax.xlane.f32.xlu0 %v1770_v63 }
 0x3b6   : >> { %v1736_v0 = vpop.xlane.xlu1 %1735 }
 0x3b7   : >> { %v1780_v1 = vsub.f32 %v5116_v50, %v1736_v0 }
 0x3b8   : >> { %v1733_v2 = vpop.xlane.xlu0 %1732 }
 0x3b9   : >> { %v1797_v3 = vmul.f32 1.442695, %v1780_v1  ;;  %v1779_v4 = vsub.f32 %v5124_v53, %v1733_v2 }
 0x3ba   : >> { %v1742_v5 = vpop.xlane.xlu1 %1741 }
 0x3bb   : >> { %4551 = vpow2.f32 %v1797_v3  ;;  %v1795_v39 = vmul.f32 1.442695, %v1779_v4  ;;  %v1782_v8 = vsub.f32 %v5119_v51, %v1742_v5 }
 0x3bc   : >> { %v1739_v9 = vpop.xlane.xlu0 %1738 }
 0x3bd   : >> { %4553 = vpow2.f32 %v1795_v39  ;;  %v1801_v11 = vmul.f32 1.442695, %v1782_v8  ;;  %v1781_v12 = vsub.f32 %v5127_v56, %v1739_v9 }
 0x3be   : >> { %v1754_v14 = vpop.xlane.xlu1 %1753 }
 0x3bf   : >> { %4555 = vpow2.f32 %v1801_v11  ;;  %v1799_v15 = vmul.f32 1.442695, %v1781_v12  ;;  %v1786_v16 = vsub.f32 %v5136_v6, %v1754_v14 }
 0x3c0   : >> { %v1748_v50 = vpop.xlane.xlu0 %1747 }
 0x3c1   : >> { %4557 = vpow2.f32 %v1799_v15  ;;  %v1809_v18 = vmul.f32 1.442695, %v1786_v16  ;;  %v1784_v53 = vsub.f32 %v5139_v7, %v1748_v50 }
 0x3c2   : >> { %v1751_v19 = vpop.xlane.xlu1 %1750 }
 0x3c3   : >> { %v1805_v20 = vmul.f32 1.442695, %v1784_v53  ;;  %v1785_v21 = vsub.f32 %v5146_v10, %v1751_v19  ;;  %4559 = vpow2.f32 %v1809_v18  ;;  %v3897_v53 = vld [vmem:[%s5023_s12 + $0x308] sm:$0xff] }
 0x3c4   : >> { %v1745_v51 = vpop.xlane.xlu0 %1744  ;;  %4280 = vmatprep.subr.mxu0 %v3897_v53 }
 0x3c5   : >> { %4561 = vpow2.f32 %v1805_v20  ;;  %v1807_v22 = vmul.f32 1.442695, %v1785_v21  ;;  %v1783_v56 = vsub.f32 %v5149_v13, %v1745_v51  ;;  %4281 = vmatpush3.msra.mxu0 %v3897_v53  ;;  %v3896_v21 = vld [vmem:[%s5023_s12 + $0x300] sm:$0xff] }
 0x3c6   : >> { %v1766_v17 = vpop.xlane.xlu1 %1765  ;;  %4282 = vmatprep.subr.mxu0 %v3896_v21 }
 0x3c7   : >> { %v1803_v23 = vmul.f32 1.442695, %v1783_v56  ;;  %v1790_v24 = vsub.f32 %v5156_v26, %v1766_v17  ;;  %4563 = vpow2.f32 %v1807_v22  ;;  %4283 = vmatpush3.msra.mxu0 %v3896_v21  ;;  %v3899_v17 = vld [vmem:[%s5023_s12 + $0x338] sm:$0xff] }
 0x3c8   : >> { %v5204_v6 = vpop.eup %4551  ;;  %v1760_v25 = vpop.xlane.xlu0 %1759  ;;  %4287 = vmatprep.subr.mxu1 %v3899_v17 }
 0x3c9   : >> { %4565 = vpow2.f32 %v1803_v23  ;;  %v1817_v7 = vmul.f32 1.442695, %v1790_v24  ;;  %v1788_v28 = vsub.f32 %v5159_v27, %v1760_v25  ;;  %v1830_v10 = vsel %vm692_vm1, %v5204_v6, 0.0  ;;  %v3898_v23 = vld [vmem:[%s5023_s12 + $0x330] sm:$0xff]  ;;  %4288 = vmatpush3.msra.mxu1 %v3899_v17  ;;  %v3901_v24 = vld [vmem:[%s5023_s12 + $0x368] sm:$0xff]  ;;  %v3903_v25 = vld [vmem:[%s5023_s12 + $0x398] sm:$0xff] }
 0x3ca   : >> { %v5209_v29 = vpop.eup %4553  ;;  %v1763_v36 = vpop.xlane.xlu1 %1762  ;;  %1831 = vadd.xlane.f32.xlu0 %v1830_v10  ;;  %4289 = vmatprep.subr.mxu1 %v3898_v23 }
 0x3cb   : >> { %v1813_v13 = vmul.f32 1.442695, %v1788_v28  ;;  %v1789_v38 = vsub.f32 %v5166_v31, %v1763_v36  ;;  %4567 = vpow2.f32 %v1817_v7  ;;  %v1827_v41 = vsel %vm692_vm1, %v5209_v29, 0.0  ;;  %4290 = vmatpush3.msra.mxu1 %v3898_v23  ;;  %4294 = vmatprep.subr.mxu0 %v3901_v24 }
 0x3cc   : >> { %v5212_v40 = vpop.eup %4555  ;;  %v1757_v26 = vpop.xlane.xlu0 %1756  ;;  %4301 = vmatprep.subr.mxu1 %v3903_v25  ;;  %v2593_v7 = vrot.slane %v5107_v30, %v1713_v35 }
 0x3cd   : >> { %4569 = vpow2.f32 %v1813_v13  ;;  %v1815_v42 = vmul.f32 1.442695, %v1789_v38  ;;  %v1787_v27 = vsub.f32 %v5169_v32, %v1757_v26  ;;  %v1836_v43 = vsel %vm692_vm1, %v5212_v40, 0.0 }
 0x3ce   : >> { %v5219_v44 = vpop.eup %4557  ;;  %1837 = vadd.xlane.f32.xlu1 %v1836_v43  ;;  %1828 = vadd.xlane.f32.xlu0 %v1827_v41  ;;  %v2595_v28 = vsel %vm2589_vm2, %v2593_v7, 0.0  ;;  %v2594_v10 = vsel %vm2588_vm3, %v2593_v7, 0.0 }
 0x3cf   : >> { %v1811_v45 = vmul.f32 1.442695, %v1787_v27  ;;  %4571 = vpow2.f32 %v1815_v42  ;;  %v1833_v32 = vsel %vm692_vm1, %v5219_v44, 0.0  ;;  %v2599_v36 = vsel %vm692_vm1, %v2595_v28, 0.0 }
 0x3d0   : >> { %v1775_v31 = vpop.xlane.xlu1 %1774  ;;  %v1769_v46 = vpop.xlane.xlu0 %1768  ;;  %v2596_v13 = vsel %vm692_vm1, %v2594_v10, 0.0  ;;  %v3910_v10 = vld [vmem:[%s5023_s12 + $0x450] sm:$0xff] }
 0x3d1   : >> { %v5221_v47 = vpop.eup %4559  ;;  %4573 = vpow2.f32 %v1811_v45  ;;  %v1793_v48 = vsub.f32 %v5176_v55, %v1775_v31  ;;  %v1791_v49 = vsub.f32 %v5179_v57, %v1769_v46 }
 0x3d2   : >> { %v5227_v52 = vpop.eup %4561  ;;  %1834 = vadd.xlane.f32.xlu1 %v1833_v32  ;;  %v1848_v1 = vsel %vm692_vm1, %v5221_v47, 0.0 }
 0x3d3   : >> { %v1823_v54 = vmul.f32 1.442695, %v1793_v48  ;;  %v1819_v58 = vmul.f32 1.442695, %v1791_v49  ;;  %v1842_v59 = vsel %vm692_vm1, %v5227_v52, 0.0 }
 0x3d4   : >> { %v1778_v62 = vpop.xlane.xlu1 %1777  ;;  %1843 = vadd.xlane.f32.xlu0 %v1842_v59  ;;  %v1772_v63 = vpop.xlane.xlu0 %1771 }
 0x3d5   : >> { %v5231_v0 = vpop.eup %4563  ;;  %4575 = vpow2.f32 %v1823_v54  ;;  %v1794_v55 = vsub.f32 %v5186_v60, %v1778_v62  ;;  %v1792_v57 = vsub.f32 %v5189_v61, %v1772_v63  ;;  %v3900_v62 = vld [vmem:[%s5023_s12 + $0x360] sm:$0xff] }
 0x3d6   : >> { %v5237_v2 = vpop.eup %4565  ;;  %4577 = vpow2.f32 %v1819_v58  ;;  %1849 = vadd.xlane.f32.xlu1 %v1848_v1  ;;  %v1845_v60 = vsel %vm692_vm1, %v5231_v0, 0.0 }
 0x3d7   : >> { %v1825_v3 = vmul.f32 1.442695, %v1794_v55  ;;  %v1821_v4 = vmul.f32 1.442695, %v1792_v57  ;;  %v1839_v5 = vsel %vm692_vm1, %v5237_v2, 0.0  ;;  %v3905_v57 = vld [vmem:[%s5023_s12 + $0x3c8] sm:$0xff] }
 0x3d8   : >> { %1840 = vadd.xlane.f32.xlu0 %v1839_v5  ;;  %v5241_v39 = vpop.eup %4567 }
 0x3d9   : >> { %4579 = vpow2.f32 %v1825_v3  ;;  %v1860_v11 = vsel %vm692_vm1, %v5241_v39, 0.0 }
 0x3da   : >> { %v5245_v61 = vpop.eup %4569  ;;  %4581 = vpow2.f32 %v1821_v4  ;;  %1846 = vadd.xlane.f32.xlu1 %v1845_v60 }
 0x3db   : >> { %v1854_v8 = vsel %vm692_vm1, %v5245_v61, 0.0 }
 0x3dc   : >> { %1855 = vadd.xlane.f32.xlu0 %v1854_v8  ;;  %v5249_v9 = vpop.eup %4571 }
 0x3dd   : >> { %v1857_v15 = vsel %vm692_vm1, %v5249_v9, 0.0 }
 0x3de   : >> { %v5253_v12 = vpop.eup %4573  ;;  %1861 = vadd.xlane.f32.xlu1 %v1860_v11 }
 0x3df   : >> { %v1851_v14 = vsel %vm692_vm1, %v5253_v12, 0.0 }
 0x3e0   : >> { %1852 = vadd.xlane.f32.xlu0 %v1851_v14 }
 0x3e2   : >> { %v5259_v16 = vpop.eup %4575  ;;  %1858 = vadd.xlane.f32.xlu1 %v1857_v15 }
 0x3e3   : >> { %v5261_v50 = vpop.eup %4577  ;;  %v1869_v19 = vsel %vm692_vm1, %v5259_v16, 0.0 }
 0x3e4   : >> { %v1863_v18 = vsel %vm692_vm1, %v5261_v50, 0.0 }
 0x3e5   : >> { %1864 = vadd.xlane.f32.xlu0 %v1863_v18  ;;  %v3904_v18 = vld [vmem:[%s5023_s12 + $0x3c0] sm:$0xff] }
 0x3e6   : >> { %v5268_v20 = vpop.eup %4579  ;;  %1870 = vadd.xlane.f32.xlu1 %v1869_v19  ;;  %v3906_v19 = vld [vmem:[%s5023_s12 + $0x3f0] sm:$0xff] }
 0x3e7   : >> { %v5271_v51 = vpop.eup %4581  ;;  %v1872_v56 = vsel %vm692_vm1, %v5268_v20, 0.0 }
 0x3e8   : >> { %v1866_v22 = vsel %vm692_vm1, %v5271_v51, 0.0 }
 0x3e9   : >> { %1867 = vadd.xlane.f32.xlu0 %v1866_v22 }
 0x3ea   : >> { %1873 = vadd.xlane.f32.xlu1 %v1872_v56 }
 0x3ed   : >> { %2597 = vadd.xlane.f32.xlu0 %v2596_v13 }
 0x3ee   : >> { %2600 = vadd.xlane.f32.xlu1 %v2599_v36 }
 0x453   : >> { %v1832_v38 = vpop.xlane.xlu0 %1831 }
 0x454   : >> { %4583 = vrcp.f32 %v1832_v38 }
 0x457   : >> { %v1838_v26 = vpop.xlane.xlu1 %1837  ;;  %v1829_v41 = vpop.xlane.xlu0 %1828 }
 0x458   : >> { %4585 = vrcp.f32 %v1829_v41  ;;  %v3913_v41 = vld [vmem:[%s5023_s12 + $0x480] sm:$0xff] }
 0x459   : >> { %4587 = vrcp.f32 %v1838_v26  ;;  %v3914_v26 = vld [vmem:[%s5023_s12 + $0x488] sm:$0xff] }
 0x45b   : >> { %v1835_v42 = vpop.xlane.xlu1 %1834 }
 0x45c   : >> { %4589 = vrcp.f32 %v1835_v42  ;;  %v3916_v42 = vld [vmem:[%s5023_s12 + $0x4b8] sm:$0xff] }
 0x45d   : >> { %v1844_v30 = vpop.xlane.xlu0 %1843 }
 0x45e   : >> { %4591 = vrcp.f32 %v1844_v30  ;;  %v3930_v30 = vld [vmem:[%s5484_s7 + $0x1] ss:$0 sm:$0xff] }
 0x45f   : >> { %v1850_v35 = vpop.xlane.xlu1 %1849 }
 0x461   : >> { %v1841_v27 = vpop.xlane.xlu0 %1840  ;;  %v4584_v45 = vpop.eup %4583 }
 0x462   : >> { %4593 = vrcp.f32 %v1841_v27  ;;  %v1892_v54 = vmul.f32 %v4584_v45, %v5204_v6  ;;  %v3902_v6 = vld [vmem:[%s5023_s12 + $0x390] sm:$0xff] }
 0x463   : >> { %4595 = vrcp.f32 %v1850_v35  ;;  %v1847_v43 = vpop.xlane.xlu1 %1846  ;;  %v3915_v35 = vld [vmem:[%s5023_s12 + $0x4b0] sm:$0xff] }
 0x464   : >> { %4597 = vrcp.f32 %v1847_v43  ;;  %v890_v43 = vadd.f32 %v3930_v30, %v3916_v42 }
 0x465   : >> { %v1856_v31 = vpop.xlane.xlu0 %1855  ;;  %v4586_v46 = vpop.eup %4585 }
 0x466   : >> { %v1891_v49 = vmul.f32 %v4586_v46, %v5209_v29  ;;  %v4588_v32 = vpop.eup %4587  ;;  %4599 = vrcp.f32 %v1856_v31  ;;  %v889_v31 = vadd.f32 %v3930_v30, %v3915_v35 }
 0x467   : >> { %v1862_v48 = vpop.xlane.xlu1 %1861  ;;  %v1894_v29 = vmul.f32 %v4588_v32, %v5212_v40  ;;  %v3940_v32 = vmul.f32 -1.442695, %v890_v43 }
 0x468   : >> { %4284 = vmatprep.mubr.msk.f32.mxu0 %vm692_vm1, %v1891_v49  ;;  %v3931_v49 = vld [vmem:[%s5484_s7 + $0x2] ss:$0 sm:$0xff] }
 0x469   : >> { %v4590_v58 = vpop.eup %4589  ;;  %v1853_v59 = vpop.xlane.xlu0 %1852  ;;  %4285 = vmatmul.mubr.msk.f32.vlgmr.msra.gmra.mxu0 %vm692_vm1, %v1892_v54  ;;  %v3917_v54 = vld [vmem:[%s5023_s12 + $0x4e0] sm:$0xff] }
 0x46a   : >> { %4601 = vrcp.f32 %v1853_v59  ;;  %v1893_v63 = vmul.f32 %v4590_v58, %v5219_v44  ;;  %4295 = vmatpush3.msra.mxu0 %v3901_v24  ;;  %v3907_v44 = vld [vmem:[%s5023_s12 + $0x3f8] sm:$0xff]  ;;  %v3939_v58 = vmul.f32 -1.442695, %v889_v31 }
 0x46b   : >> { %4603 = vrcp.f32 %v1862_v48  ;;  %v1859_v55 = vpop.xlane.xlu1 %1858  ;;  %4296 = vmatprep.subr.mxu0 %v3900_v62  ;;  %v4592_v1 = vpop.eup %4591  ;;  %v3918_v48 = vld [vmem:[%s5023_s12 + $0x4e8] sm:$0xff]  ;;  %v3920_v59 = vld [vmem:[%s5023_s12 + $0x518] sm:$0xff] }
 0x46c   : >> { %4605 = vrcp.f32 %v1859_v55  ;;  %4291 = vmatprep.mubr.msk.f32.mxu1 %vm692_vm1, %v1893_v63  ;;  %4297 = vmatpush3.msra.mxu0 %v3900_v62  ;;  %v1896_v11 = vmul.f32 %v4592_v1, %v5227_v52  ;;  %v3909_v52 = vld [vmem:[%s5023_s12 + $0x428] sm:$0xff]  ;;  %v3932_v62 = vld [vmem:[%s5484_s7 + $0x3] ss:$0 sm:$0xff]  ;;  %v892_v63 = vadd.f32 %v3931_v49, %v3918_v48  ;;  %v891_v55 = vadd.f32 %v3931_v49, %v3917_v54 }
 0x46d   : >> { %4292 = vmatmul.mubr.msk.f32.vlgmr.msra.gmra.mxu1 %vm692_vm1, %v1894_v29  ;;  %4308 = vmatprep.subr.mxu0 %v3905_v57  ;;  %v3919_v29 = vld [vmem:[%s5023_s12 + $0x510] sm:$0xff] }
 0x46e   : >> { %v1865_v3 = vpop.xlane.xlu0 %1864  ;;  %4302 = vmatpush3.msra.mxu1 %v3903_v25  ;;  %v3908_v25 = vld [vmem:[%s5023_s12 + $0x420] sm:$0xff]  ;;  %v893_v1 = vadd.f32 %v3932_v62, %v3919_v29 }
 0x46f   : >> { %v4594_v4 = vpop.eup %4593  ;;  %4607 = vrcp.f32 %v1865_v3  ;;  %v1871_v5 = vpop.xlane.xlu1 %1870  ;;  %4303 = vmatprep.subr.mxu1 %v3902_v6  ;;  %v3941_v3 = vmul.f32 -1.442695, %v891_v55 }
 0x470   : >> { %v4596_v40 = vpop.eup %4595  ;;  %4609 = vrcp.f32 %v1871_v5  ;;  %v1895_v60 = vmul.f32 %v4594_v4, %v5237_v2  ;;  %4304 = vmatpush3.msra.mxu1 %v3902_v6  ;;  %v3942_v6 = vmul.f32 -1.442695, %v892_v63  ;;  %v3933_v4 = vld [vmem:[%s5484_s7 + $0x4] ss:$0 sm:$0xff] }
 0x471   : >> { %v4598_v8 = vpop.eup %4597  ;;  %4315 = vmatprep.subr.mxu1 %v3907_v44  ;;  %v1898_v2 = vmul.f32 %v4596_v40, %v5221_v47  ;;  %v3921_v40 = vld [vmem:[%s5023_s12 + $0x540] sm:$0xff] }
 0x472   : >> { %v1868_v14 = vpop.xlane.xlu0 %1867  ;;  %4298 = vmatprep.mubr.msk.f32.mxu0 %vm692_vm1, %v1895_v60  ;;  %v1897_v15 = vmul.f32 %v4598_v8, %v5231_v0  ;;  %v3911_v0 = vld [vmem:[%s5023_s12 + $0x458] sm:$0xff]  ;;  %v3934_v8 = vld [vmem:[%s5484_s7 + $0x5] ss:$0 sm:$0xff] }
 0x473   : >> { %4611 = vrcp.f32 %v1868_v14  ;;  %v1874_v53 = vpop.xlane.xlu1 %1873  ;;  %4299 = vmatmul.mubr.msk.f32.vlgmr.msra.gmra.mxu0 %vm692_vm1, %v1896_v11  ;;  %v4600_v21 = vpop.eup %4599  ;;  %v3924_v60 = vld [vmem:[%s5023_s12 + $0x578] sm:$0xff]  ;;  %v3943_v11 = vmul.f32 -1.442695, %v893_v1 }
 0x474   : >> { %4613 = vrcp.f32 %v1874_v53  ;;  %4305 = vmatprep.mubr.msk.f32.mxu1 %vm692_vm1, %v1897_v15  ;;  %4309 = vmatpush3.msra.mxu0 %v3905_v57  ;;  %v1900_v23 = vmul.f32 %v4600_v21, %v5245_v61  ;;  %v894_v57 = vadd.f32 %v3932_v62, %v3920_v59  ;;  %v895_v15 = vadd.f32 %v3933_v4, %v3921_v40 }
 0x475   : >> { %4306 = vmatmul.mubr.msk.f32.vlgmr.msra.gmra.mxu1 %vm692_vm1, %v1898_v2  ;;  %4310 = vmatprep.subr.mxu0 %v3904_v18  ;;  %v898_v53 = vadd.f32 %v3934_v8, %v3924_v60 }
 0x476   : >> { %4311 = vmatpush3.msra.mxu0 %v3904_v18  ;;  %4316 = vmatpush3.msra.mxu1 %v3907_v44  ;;  %v2598_v38 = vpop.xlane.xlu0 %2597  ;;  %v3922_v44 = vld [vmem:[%s5023_s12 + $0x548] sm:$0xff]  ;;  %v3944_v5 = vmul.f32 -1.442695, %v894_v57  ;;  %v3923_v18 = vld [vmem:[%s5023_s12 + $0x570] sm:$0xff]  ;;  %v3945_v21 = vmul.f32 -1.442695, %v895_v15 }
 0x477   : >> { %v4602_v22 = vpop.eup %4601  ;;  %4317 = vmatprep.subr.mxu1 %v3906_v19  ;;  %4322 = vmatprep.subr.mxu0 %v3909_v52  ;;  %2604 = vst.msk [vmem:[%s2602_s15] sm:$0xff] %vm2603_vm4, %v2598_v38  ;;  %v896_v14 = vadd.f32 %v3933_v4, %v3922_v44 }
 0x478   : >> { %v4604_v56 = vpop.eup %4603  ;;  %v1899_v47 = vmul.f32 %v4602_v22, %v5253_v12  ;;  %4318 = vmatpush3.msra.mxu1 %v3906_v19  ;;  %v3935_v22 = vld [vmem:[%s5484_s7 + $0x6] ss:$0 sm:$0xff] }
 0x479   : >> { %v4606_v17 = vpop.eup %4605  ;;  %4329 = vmatprep.subr.mxu1 %v3911_v0  ;;  %v1902_v7 = vmul.f32 %v4604_v56, %v5241_v39  ;;  %v3946_v19 = vmul.f32 -1.442695, %v896_v14 }
 0x47a   : >> { %4312 = vmatprep.mubr.msk.f32.mxu0 %vm692_vm1, %v1899_v47  ;;  %v1901_v24 = vmul.f32 %v4606_v17, %v5249_v9  ;;  %v3948_v47 = vmul.f32 -1.442695, %v898_v53  ;;  %v3928_v17 = vld [vmem:[%s5023_s12 + $0x5d8] sm:$0xff] }
 0x47b   : >> { %4313 = vmatmul.mubr.msk.f32.vlgmr.msra.gmra.mxu0 %vm692_vm1, %v1900_v23  ;;  %v3936_v23 = vld [vmem:[%s5484_s7 + $0x7] ss:$0 sm:$0xff] }
 0x47c   : >> { %v4608_v28 = vpop.eup %4607  ;;  %4319 = vmatprep.mubr.msk.f32.mxu1 %vm692_vm1, %v1901_v24  ;;  %4323 = vmatpush3.msra.mxu0 %v3909_v52  ;;  %v897_v52 = vadd.f32 %v3934_v8, %v3923_v18 }
 0x47d   : >> { %v4610_v12 = vpop.eup %4609  ;;  %4320 = vmatmul.mubr.msk.f32.vlgmr.msra.gmra.mxu1 %vm692_vm1, %v1902_v7  ;;  %v1903_v61 = vmul.f32 %v4608_v28, %v5261_v50  ;;  %4324 = vmatprep.subr.mxu0 %v3908_v25  ;;  %v3925_v7 = vld [vmem:[%s5023_s12 + $0x5a0] sm:$0xff] }
 0x47e   : >> { %4330 = vmatpush3.msra.mxu1 %v3911_v0  ;;  %v1905_v9 = vmul.f32 %v4610_v12, %v5259_v16  ;;  %4325 = vmatpush3.msra.mxu0 %v3908_v25  ;;  %v2601_v16 = vpop.xlane.xlu1 %2600  ;;  %v3926_v0 = vld [vmem:[%s5023_s12 + $0x5a8] sm:$0xff] }
 0x47f   : >> { %4326 = vmatprep.mubr.msk.f32.mxu0 %vm692_vm1, %v1903_v61  ;;  %4331 = vmatprep.subr.mxu1 %v3910_v10  ;;  %2605 = vst.msk [vmem:[%s2602_s15 + $0x8] sm:$0xff] %vm2603_vm4, %v2601_v16  ;;  %v900_v12 = vadd.f32 %v3935_v22, %v3926_v0  ;;  %v3927_v61 = vld [vmem:[%s5023_s12 + $0x5d0] sm:$0xff]  ;;  %s5374_s12 = scalar_lea.vmem [#allocation3], %s5020_s11 }
 0x480   : >> { %v4612_v39 = vpop.eup %4611  ;;  %4333 = vmatprep.mubr.msk.f32.mxu1 %vm692_vm1, %v1905_v9  ;;  %4332 = vmatpush3.msra.mxu1 %v3910_v10  ;;  %v3947_v10 = vmul.f32 -1.442695, %v897_v52  ;;  %v901_v16 = vadd.f32 %v3936_v23, %v3927_v61 }
 0x481   : >> { %v4614_v36 = vpop.eup %4613  ;;  %v1904_v13 = vmul.f32 %v4612_v39, %v5271_v51  ;;  %v3929_v51 = vld [vmem:[%s5484_s7] ss:$0 sm:$0xff]  ;;  %v902_v39 = vadd.f32 %v3936_v23, %v3928_v17  ;;  %v3950_v38 = vmul.f32 -1.442695, %v900_v12 }
 0x482   : >> { %v1906_v50 = vmul.f32 %v4614_v36, %v5268_v20  ;;  %v888_v20 = vadd.f32 %v3929_v51, %v3914_v26  ;;  %v887_v27 = vadd.f32 %v3929_v51, %v3913_v41  ;;  %v3951_v30 = vmul.f32 -1.442695, %v901_v16 }
 0x483   : >> { %4327 = vmatmul.mubr.msk.f32.vlgmr.msra.gmra.mxu0 %vm692_vm1, %v1904_v13  ;;  %v899_v13 = vadd.f32 %v3935_v22, %v3925_v7  ;;  %v3952_v51 = vmul.f32 -1.442695, %v902_v39 }
 0x484   : >> { %4334 = vmatmul.mubr.msk.f32.vlgmr.msra.gmra.mxu1 %vm692_vm1, %v1906_v50  ;;  %v3938_v45 = vmul.f32 -1.442695, %v888_v20  ;;  %v3937_v46 = vmul.f32 -1.442695, %v887_v27 }
 0x485   : >> { %v3949_v20 = vmul.f32 -1.442695, %v899_v13 }
 0x486   : >> { %4615 = vpow2.f32 %v3938_v45 }
 0x487   : >> { %4617 = vpow2.f32 %v3937_v46 }
 0x488   : >> { %4619 = vpow2.f32 %v3940_v32 }
 0x489   : >> { %4621 = vpow2.f32 %v3939_v58 }
 0x48a   : >> { %4623 = vpow2.f32 %v3942_v6 }
 0x48b   : >> { %4625 = vpow2.f32 %v3941_v3 }
 0x48c   : >> { %4627 = vpow2.f32 %v3944_v5 }
 0x48d   : >> { %4629 = vpow2.f32 %v3943_v11 }
 0x48e   : >> { %4631 = vpow2.f32 %v3946_v19 }
 0x48f   : >> { %4633 = vpow2.f32 %v3945_v21 }
 0x490   : >> { %4635 = vpow2.f32 %v3948_v47 }
 0x493   : >> { %v4616_v2 = vpop.eup %4615 }
 0x494   : >> { %v4618_v56 = vpop.eup %4617  ;;  %v952_v25 = vadd.f32 1.0, %v4616_v2 }
 0x495   : >> { %v4620_v24 = vpop.eup %4619  ;;  %v951_v9 = vadd.f32 1.0, %v4618_v56 }
 0x496   : >> { %v4622_v28 = vpop.eup %4621  ;;  %v954_v36 = vadd.f32 1.0, %v4620_v24  ;;  %4637 = vrcp.f32 %v952_v25 }
 0x497   : >> { %v953_v50 = vadd.f32 1.0, %v4622_v28  ;;  %4639 = vpow2.f32 %v3947_v10  ;;  %v4624_v26 = vpop.eup %4623 }
 0x498   : >> { %4641 = vrcp.f32 %v951_v9  ;;  %v4626_v41 = vpop.eup %4625  ;;  %v956_v35 = vadd.f32 1.0, %v4624_v26 }
 0x499   : >> { %4643 = vrcp.f32 %v954_v36  ;;  %v4628_v42 = vpop.eup %4627  ;;  %v955_v43 = vadd.f32 1.0, %v4626_v41 }
 0x49a   : >> { %4645 = vrcp.f32 %v953_v50  ;;  %v4630_v27 = vpop.eup %4629  ;;  %v958_v45 = vadd.f32 1.0, %v4628_v42 }
 0x49b   : >> { %4647 = vpow2.f32 %v3950_v38  ;;  %v957_v31 = vadd.f32 1.0, %v4630_v27  ;;  %v4632_v46 = vpop.eup %4631 }
 0x49c   : >> { %4649 = vpow2.f32 %v3952_v51  ;;  %v4634_v48 = vpop.eup %4633  ;;  %v960_v54 = vadd.f32 1.0, %v4632_v46 }
 0x49d   : >> { %4651 = vpow2.f32 %v3949_v20  ;;  %v4636_v49 = vpop.eup %4635  ;;  %v959_v59 = vadd.f32 1.0, %v4634_v48 }
 0x49e   : >> { %4653 = vpow2.f32 %v3951_v30  ;;  %v962_v55 = vadd.f32 1.0, %v4636_v49 }
 0x49f   : >> { %4655 = vrcp.f32 %v956_v35 }
 0x4a0   : >> { %4657 = vrcp.f32 %v955_v43 }
 0x4a1   : >> { %4659 = vrcp.f32 %v958_v45 }
 0x4a2   : >> { %4661 = vrcp.f32 %v957_v31 }
 0x4a3   : >> { %v4638_v32 = vpop.eup %4637  ;;  %4663 = vrcp.f32 %v960_v54  ;;  %v2615_v54 = vld [vmem:[#allocation10 + $0x18] sm:$0xff] (%p751_p2) }
 0x4a4   : >> { %v4640_v58 = vpop.eup %4639  ;;  %4665 = vrcp.f32 %v959_v59  ;;  %4353 = vmatprep.subr.mxu1 (%p751_p2), %v2615_v54  ;;  %v2614_v59 = vld [vmem:[#allocation10 + $0x10] sm:$0xff] (%p751_p2) }
 0x4a5   : >> { %v4642_v62 = vpop.eup %4641  ;;  %v961_v3 = vadd.f32 1.0, %v4640_v58  ;;  %4667 = vrcp.f32 %v962_v55  ;;  %v2626_v58 = vld [vmem:[#allocation10 + $0x30] sm:$0xff] (%p751_p2)  ;;  %4354 = vmatpush3.msra.mxu1 (%p751_p2), %v2615_v54  ;;  %v2624_v55 = vld [vmem:[#allocation10 + $0x20] sm:$0xff] (%p751_p2) }
 0x4a6   : >> { %v4644_v29 = vpop.eup %4643  ;;  %4355 = vmatprep.subr.mxu1 (%p751_p2), %v2614_v59 }
 0x4a7   : >> { %v4646_v6 = vpop.eup %4645  ;;  %4669 = vrcp.f32 %v961_v3  ;;  %4356 = vmatpush3.msra.mxu1 (%p751_p2), %v2614_v59 }
 0x4a8   : >> { %v4648_v44 = vpop.eup %4647 }
 0x4a9   : >> { %v4650_v40 = vpop.eup %4649  ;;  %v964_v18 = vadd.f32 1.0, %v4648_v44 }
 0x4aa   : >> { %v4652_v8 = vpop.eup %4651  ;;  %v966_v2 = vadd.f32 1.0, %v4650_v40 }
 0x4ab   : >> { %v4654_v14 = vpop.eup %4653  ;;  %v963_v52 = vadd.f32 1.0, %v4652_v8  ;;  %4671 = vrcp.f32 %v964_v18  ;;  %v2863_v8 = vld [vmem:[#allocation10 + $0x48] sm:$0xff] (%p751_p2) }
 0x4ac   : >> { %v4656_v53 = vpop.eup %4655  ;;  %v965_v22 = vadd.f32 1.0, %v4654_v14  ;;  %4673 = vrcp.f32 %v966_v2  ;;  %v2862_v2 = vld [vmem:[#allocation10 + $0x40] sm:$0xff] (%p751_p2) }
 0x4ad   : >> { %v4658_v19 = vpop.eup %4657  ;;  %4675 = vrcp.f32 %v963_v52  ;;  %v2993_v52 = vld [vmem:[#allocation10 + $0x60] sm:$0xff] (%p751_p2) }
 0x4ae   : >> { %v4660_v21 = vpop.eup %4659  ;;  %4677 = vrcp.f32 %v965_v22  ;;  %v3127_v22 = vld [vmem:[#allocation10 + $0x98] sm:$0xff] (%p751_p2) }
 0x4af   : >> { %v4662_v47 = vpop.eup %4661 }
 0x4b0   : >> { %v4664_v10 = vpop.eup %4663 }
 0x4b1   : >> { %v4666_v12 = vpop.eup %4665 }
 0x4b2   : >> { %v4668_v61 = vpop.eup %4667 }
 0x4b4   : >> { %v4670_v36 = vpop.eup %4669 }
 0x4b8   : >> { %v4672_v41 = vpop.eup %4671 }
 0x4b9   : >> { %v4674_v20 = vpop.eup %4673 }
 0x4ba   : >> { %v4676_v42 = vpop.eup %4675 }
 0x4bb   : >> { %v4678_v35 = vpop.eup %4677 }
 0x529   : >> { %v4286_v63 = vpop.f32.mrf.mxu0 }
 0x52a   : >> { %v2556_v57 = vmul.f32 %v4638_v32, %v4286_v63  ;;  %v2627_v32 = vld [vmem:[#allocation10 + $0x38] sm:$0xff] (%p751_p2)  ;;  %v2613_v63 = vld [vmem:[#allocation10 + $0x8] sm:$0xff] (%p751_p2) }
 0x52b   : >> { %v1979_v1 = vpop.f32.mrf.mxu0  ;;  %4336 = vmatprep.subr.mxu0 (%p751_p2), %v2627_v32  ;;  %4357 = vmatprep.subr.mxu1 (%p751_p2), %v2613_v63 }
 0x52c   : >> { %2573 = vst.msk [vmem:[%s5374_s12 + $0x8] sm:$0xff] %vm447_vm0, %v2556_v57  ;;  %v2555_v4 = vmul.f32 %v4642_v62, %v1979_v1  ;;  %4337 = vmatpush3.msra.mxu0 (%p751_p2), %v2627_v32  ;;  %v2625_v62 = vld [vmem:[#allocation10 + $0x28] sm:$0xff] (%p751_p2)  ;;  %4358 = vmatpush3.msra.mxu1 (%p751_p2), %v2613_v63  ;;  %v2996_v1 = vld [vmem:[#allocation10 + $0x78] sm:$0xff] (%p751_p2) }
 0x52d   : >> { %v4293_v5 = vpop.f32.mrf.mxu1  ;;  %4338 = vmatprep.subr.mxu0 (%p751_p2), %v2626_v58  ;;  %v3518_v32 = vld [vmem:[#allocation10 + $0xe8] sm:$0xff] (%p751_p2) }
 0x52e   : >> { %v2558_v60 = vmul.f32 %v4644_v29, %v4293_v5  ;;  %2572 = vst.msk [vmem:[%s5374_s12] sm:$0xff] %vm447_vm0, %v2555_v4  ;;  %4339 = vmatpush3.msra.mxu0 (%p751_p2), %v2626_v58  ;;  %v2612_v29 = vld [vmem:[#allocation10] sm:$0xff] (%p751_p2)  ;;  %v2864_v4 = vld [vmem:[#allocation10 + $0x50] sm:$0xff] (%p751_p2) }
 0x52f   : >> { %v2060_v11 = vpop.f32.mrf.mxu1  ;;  %4340 = vmatprep.subr.mxu0 (%p751_p2), %v2625_v62  ;;  %4359 = vmatprep.subr.mxu1 (%p751_p2), %v2612_v29  ;;  %v3386_v58 = vld [vmem:[#allocation10 + $0xc0] sm:$0xff] (%p751_p2) }
 0x530   : >> { %2575 = vst.msk [vmem:[%s5374_s12 + $0x38] sm:$0xff] %vm447_vm0, %v2558_v60  ;;  %v2557_v15 = vmul.f32 %v4646_v6, %v2060_v11  ;;  %4341 = vmatpush3.msra.mxu0 (%p751_p2), %v2625_v62  ;;  %v2865_v6 = vld [vmem:[#allocation10 + $0x58] sm:$0xff] (%p751_p2)  ;;  %4360 = vmatpush3.msra.mxu1 (%p751_p2), %v2612_v29  ;;  %v2995_v60 = vld [vmem:[#allocation10 + $0x70] sm:$0xff] (%p751_p2)  ;;  %v3517_v62 = vld [vmem:[#allocation10 + $0xe0] sm:$0xff] (%p751_p2) }
 0x531   : > { %4342 = vmatprep.subr.mxu0 (%p751_p2), %v2624_v55  ;;  %4387 = vmatprep.subr.mxu1 (%p751_p2), %v2996_v1 }
 0x532   : >> { %2574 = vst.msk [vmem:[%s5374_s12 + $0x30] sm:$0xff] %vm447_vm0, %v2557_v15  ;;  %4343 = vmatpush3.msra.mxu0 (%p751_p2), %v2624_v55 }
 0x533   : >> { %v4300_v0 = vpop.f32.mrf.mxu0  ;;  %4370 = vmatprep.subr.mxu0 (%p751_p2), %v2865_v6 }
 0x534   : >> { %v2560_v56 = vmul.f32 %v4656_v53, %v4300_v0  ;;  %v2994_v53 = vld [vmem:[#allocation10 + $0x68] sm:$0xff] (%p751_p2) }
 0x535   : >> { %v2141_v17 = vpop.f32.mrf.mxu0  ;;  %v4307_v23 = vpop.f32.mrf.mxu1 }
 0x536   : >> { %2577 = vst.msk [vmem:[%s5374_s12 + $0x68] sm:$0xff] %vm447_vm0, %v2560_v56  ;;  %v2559_v24 = vmul.f32 %v4658_v19, %v2141_v17  ;;  %v2562_v25 = vmul.f32 %v4660_v21, %v4307_v23  ;;  %v3126_v23 = vld [vmem:[#allocation10 + $0x90] sm:$0xff] (%p751_p2) }
 0x537   : >> { %v2222_v7 = vpop.f32.mrf.mxu1 }
 0x538   : >> { %2576 = vst.msk [vmem:[%s5374_s12 + $0x60] sm:$0xff] %vm447_vm0, %v2559_v24  ;;  %2579 = vst.msk [vmem:[%s5374_s12 + $0x98] sm:$0xff] %vm447_vm0, %v2562_v25  ;;  %v2561_v28 = vmul.f32 %v4662_v47, %v2222_v7  ;;  %v3258_v47 = vld [vmem:[#allocation10 + $0xb8] sm:$0xff] (%p751_p2) }
 0x53a   : >> { %2578 = vst.msk [vmem:[%s5374_s12 + $0x90] sm:$0xff] %vm447_vm0, %v2561_v28  ;;  %v3257_v28 = vld [vmem:[#allocation10 + $0xb0] sm:$0xff] (%p751_p2) }
 0x53b   : >> { %v4314_v9 = vpop.f32.mrf.mxu0 }
 0x53c   : >> { %v2564_v39 = vmul.f32 %v4664_v10, %v4314_v9  ;;  %v3125_v10 = vld [vmem:[#allocation10 + $0x88] sm:$0xff] (%p751_p2) }
 0x53d   : >> { %v2303_v13 = vpop.f32.mrf.mxu0  ;;  %v4321_v50 = vpop.f32.mrf.mxu1 }
 0x53e   : >> { %2581 = vst.msk [vmem:[%s5374_s12 + $0xc8] sm:$0xff] %vm447_vm0, %v2564_v39  ;;  %v2563_v16 = vmul.f32 %v4666_v12, %v2303_v13  ;;  %v2566_v38 = vmul.f32 %v4668_v61, %v4321_v50  ;;  %v3256_v39 = vld [vmem:[#allocation10 + $0xa8] sm:$0xff] (%p751_p2)  ;;  %v3124_v13 = vld [vmem:[#allocation10 + $0x80] sm:$0xff] (%p751_p2) }
 0x53f   : >> { %v2384_v26 = vpop.f32.mrf.mxu1 }
 0x540   : >> { %2580 = vst.msk [vmem:[%s5374_s12 + $0xc0] sm:$0xff] %vm447_vm0, %v2563_v16  ;;  %2583 = vst.msk [vmem:[%s5374_s12 + $0xf8] sm:$0xff] %vm447_vm0, %v2566_v38  ;;  %v2565_v51 = vmul.f32 %v4670_v36, %v2384_v26  ;;  %v3255_v16 = vld [vmem:[#allocation10 + $0xa0] sm:$0xff] (%p751_p2) }
 0x542   : >> { %2582 = vst.msk [vmem:[%s5374_s12 + $0xf0] sm:$0xff] %vm447_vm0, %v2565_v51  ;;  %v3389_v51 = vld [vmem:[#allocation10 + $0xd8] sm:$0xff] (%p751_p2) }
 0x543   : >> { %v4328_v30 = vpop.f32.mrf.mxu0 }
 0x544   : >> { %v2568_v27 = vmul.f32 %v4672_v41, %v4328_v30  ;;  %v4335_v43 = vpop.f32.mrf.mxu1  ;;  %v3388_v30 = vld [vmem:[#allocation10 + $0xd0] sm:$0xff] (%p751_p2) }
 0x545   : >> { %v2465_v45 = vpop.f32.mrf.mxu0  ;;  %v2570_v31 = vmul.f32 %v4674_v20, %v4335_v43  ;;  %753 = sbr.rel (!%p751_p2) target bundleno = 600 (0x258), region = 165  ;;  %v3520_v20 = vld [vmem:[#allocation10 + $0xf8] sm:$0xff] (%p751_p2) }
 0x546   : >> { %2585 = vst.msk [vmem:[%s5374_s12 + $0x128] sm:$0xff] %vm447_vm0, %v2568_v27  ;;  %v2567_v46 = vmul.f32 %v4676_v42, %v2465_v45  ;;  %v2546_v48 = vpop.f32.mrf.mxu1  ;;  %v3519_v45 = vld [vmem:[#allocation10 + $0xf0] sm:$0xff] (%p751_p2) }
 0x547   : >> { %2587 = vst.msk [vmem:[%s5374_s12 + $0x158] sm:$0xff] %vm447_vm0, %v2570_v31  ;;  %v2569_v49 = vmul.f32 %v4678_v35, %v2546_v48  ;;  %v3387_v31 = vld [vmem:[#allocation10 + $0xc8] sm:$0xff] (%p751_p2) }
 0x548   : >> { %2584 = vst.msk [vmem:[%s5374_s12 + $0x120] sm:$0xff] %vm447_vm0, %v2567_v46 }
 0x549   : >> { %2586 = vst.msk [vmem:[%s5374_s12 + $0x150] sm:$0xff] %vm447_vm0, %v2569_v49 }
 0x550   : > { %v2617_v57 = vld [vmem:[#allocation3 + $0x30] sm:$0xff]  ;;  %v2606_v33 = vld [vmem:[#allocation3] sm:$0xff]  ;;  %v2618_v34 = vld [vmem:[#allocation3 + $0x38] sm:$0xff] }
 0x551   : > { %v2607_v37 = vld [vmem:[#allocation3 + $0x8] sm:$0xff]  ;;  %4344 = vmatprep.mubr.msk.f32.mxu0 %vm447_vm0, %v2617_v57  ;;  %4361 = vmatprep.mubr.msk.f32.mxu1 %vm447_vm0, %v2606_v33  ;;  %v2619_v3 = vld [vmem:[#allocation3 + $0x40] sm:$0xff]  ;;  %v2608_v44 = vld [vmem:[#allocation3 + $0x10] sm:$0xff] }
 0x552   : > { %4345 = vmatmul.mubr.msk.f32.vlgmr.msra.gmra.mxu0 %vm447_vm0, %v2618_v34  ;;  %4362 = vmatmul.mubr.msk.f32.vlgmr.msra.gmra.mxu1 %vm447_vm0, %v2607_v37  ;;  %v2620_v5 = vld [vmem:[#allocation3 + $0x48] sm:$0xff]  ;;  %v2609_v40 = vld [vmem:[#allocation3 + $0x18] sm:$0xff]  ;;  %v2621_v11 = vld [vmem:[#allocation3 + $0x50] sm:$0xff] }
 0x553   : > { %4371 = vmatpush3.msra.mxu0 %v2865_v6  ;;  %4347 = vmatprep.mubr.msk.f32.mxu0 %vm447_vm0, %v2619_v3  ;;  %v2610_v14 = vld [vmem:[#allocation3 + $0x20] sm:$0xff]  ;;  %v2622_v15 = vld [vmem:[#allocation3 + $0x58] sm:$0xff]  ;;  %v2611_v18 = vld [vmem:[#allocation3 + $0x28] sm:$0xff] }
 0x554   : > { %4364 = vmatprep.mubr.msk.f32.mxu1 %vm447_vm0, %v2608_v44  ;;  %4372 = vmatprep.subr.mxu0 %v2864_v4  ;;  %v2855_v19 = vld [vmem:[#allocation3 + $0x60] sm:$0xff]  ;;  %v2856_v21 = vld [vmem:[#allocation3 + $0x68] sm:$0xff]  ;;  %v2986_v0 = vld [vmem:[#allocation3 + $0x90] sm:$0xff] }
 0x555   : > { %4388 = vmatpush3.msra.mxu1 %v2996_v1  ;;  %4373 = vmatpush3.msra.mxu0 %v2864_v4  ;;  %v2987_v56 = vld [vmem:[#allocation3 + $0x98] sm:$0xff]  ;;  %v2857_v17 = vld [vmem:[#allocation3 + $0x70] sm:$0xff]  ;;  %v2988_v25 = vld [vmem:[#allocation3 + $0xa0] sm:$0xff]  ;;  %v4789_v1 = vmov 0  }
 0x556   : > { %4348 = vmatmul.mubr.msk.f32.gmra.mxu0 %vm447_vm0, %v2620_v5  ;;  %4365 = vmatmul.mubr.msk.f32.gmra.mxu1 %vm447_vm0, %v2609_v40  ;;  %v2858_v24 = vld [vmem:[#allocation3 + $0x78] sm:$0xff]  ;;  %v2989_v7 = vld [vmem:[#allocation3 + $0xa8] sm:$0xff]  ;;  %v2859_v12 = vld [vmem:[#allocation3 + $0x80] sm:$0xff] }
 0x557   : > { %4389 = vmatprep.subr.mxu1 %v2995_v60  ;;  %4374 = vmatprep.subr.mxu0 %v2863_v8  ;;  %v2990_v61 = vld [vmem:[#allocation3 + $0xb0] sm:$0xff]  ;;  %v2860_v9 = vld [vmem:[#allocation3 + $0x88] sm:$0xff]  ;;  %v2991_v36 = vld [vmem:[#allocation3 + $0xb8] sm:$0xff] }
 0x558   : > { %4390 = vmatpush3.msra.mxu1 %v2995_v60  ;;  %4350 = vmatprep.mubr.msk.f32.mxu0 %vm447_vm0, %v2621_v11  ;;  %v3117_v50 = vld [vmem:[#allocation3 + $0xc0] sm:$0xff]  ;;  %v3118_v38 = vld [vmem:[#allocation3 + $0xc8] sm:$0xff]  ;;  %v3248_v26 = vld [vmem:[#allocation3 + $0xf0] sm:$0xff] }
 0x559   : > { %4367 = vmatprep.mubr.msk.f32.mxu1 %vm447_vm0, %v2610_v14  ;;  %4375 = vmatpush3.msra.mxu0 %v2863_v8  ;;  %v3249_v41 = vld [vmem:[#allocation3 + $0xf8] sm:$0xff]  ;;  %v3119_v42 = vld [vmem:[#allocation3 + $0xd0] sm:$0xff]  ;;  %v3250_v27 = vld [vmem:[#allocation3 + $0x100] sm:$0xff] }
 0x55a   : > { %4351 = vmatmul.mubr.msk.f32.gmra.mxu0 %vm447_vm0, %v2622_v15  ;;  %4368 = vmatmul.mubr.msk.f32.gmra.mxu1 %vm447_vm0, %v2611_v18  ;;  %v3120_v35 = vld [vmem:[#allocation3 + $0xd8] sm:$0xff]  ;;  %v3251_v43 = vld [vmem:[#allocation3 + $0x108] sm:$0xff]  ;;  %v3121_v46 = vld [vmem:[#allocation3 + $0xe0] sm:$0xff] }
 0x55b   : > { %4391 = vmatprep.subr.mxu1 %v2994_v53  ;;  %4376 = vmatprep.subr.mxu0 %v2862_v2  ;;  %v3252_v48 = vld [vmem:[#allocation3 + $0x110] sm:$0xff]  ;;  %v3122_v49 = vld [vmem:[#allocation3 + $0xe8] sm:$0xff]  ;;  %v3253_v54 = vld [vmem:[#allocation3 + $0x118] sm:$0xff] }
 0x55c   : > { %4392 = vmatpush3.msra.mxu1 %v2994_v53  ;;  %4377 = vmatpush3.msra.mxu0 %v2862_v2  ;;  %v3379_v59 = vld [vmem:[#allocation3 + $0x120] sm:$0xff]  ;;  %v3380_v63 = vld [vmem:[#allocation3 + $0x128] sm:$0xff]  ;;  %v3510_v55 = vld [vmem:[#allocation3 + $0x150] sm:$0xff] }
 0x55d   : > { %4378 = vmatprep.mubr.msk.f32.mxu0 %vm447_vm0, %v2855_v19  ;;  %4393 = vmatprep.subr.mxu1 %v2993_v52  ;;  %v3381_v29 = vld [vmem:[#allocation3 + $0x130] sm:$0xff]  ;;  %v3511_v57 = vld [vmem:[#allocation3 + $0x158] sm:$0xff]  ;;  %v3512_v33 = vld [vmem:[#allocation3 + $0x160] sm:$0xff] }
 0x55e   : > { %4379 = vmatmul.mubr.msk.f32.vlgmr.msra.gmra.mxu0 %vm447_vm0, %v2856_v21  ;;  %4394 = vmatpush3.msra.mxu1 %v2993_v52  ;;  %v3382_v34 = vld [vmem:[#allocation3 + $0x138] sm:$0xff]  ;;  %v3655_v37 = vld [vmem:[#allocation5 + $0x10] sm:$0xff]  ;;  %v3383_v6 = vld [vmem:[#allocation3 + $0x140] sm:$0xff] }
 0x55f   : > { %4395 = vmatprep.mubr.msk.f32.mxu1 %vm447_vm0, %v2986_v0  ;;  %4404 = vmatprep.subr.mxu0 %v3127_v22  ;;  %v3653_v3 = vld [vmem:[#allocation5] sm:$0xff]  ;;  %v3513_v44 = vld [vmem:[#allocation3 + $0x168] sm:$0xff]  ;;  %v3514_v4 = vld [vmem:[#allocation3 + $0x170] sm:$0xff] }
 0x560   : > { %4396 = vmatmul.mubr.msk.f32.vlgmr.msra.gmra.mxu1 %vm447_vm0, %v2987_v56  ;;  %4405 = vmatpush3.msra.mxu0 %v3127_v22  ;;  %v3384_v5 = vld [vmem:[#allocation3 + $0x148] sm:$0xff]  ;;  %v3656_v40 = vld [vmem:[#allocation5 + $0x18] sm:$0xff]  ;;  %v3657_v14 = vld [vmem:[#allocation5 + $0x20] sm:$0xff] }
 0x561   : > { %4421 = vmatprep.subr.mxu1 %v3258_v47  ;;  %4381 = vmatprep.mubr.msk.f32.mxu0 %vm447_vm0, %v2857_v17  ;;  %v3654_v60 = vld [vmem:[#allocation5 + $0x8] sm:$0xff]  ;;  %v3515_v8 = vld [vmem:[#allocation3 + $0x178] sm:$0xff] }
 0x562   : > { %4406 = vmatprep.subr.mxu0 %v3126_v23  ;;  %4422 = vmatpush3.msra.mxu1 %v3258_v47  ;;  %v3658_v11 = vld [vmem:[#allocation5 + $0x28] sm:$0xff] }
 0x563   : > { %4382 = vmatmul.mubr.msk.f32.gmra.mxu0 %vm447_vm0, %v2858_v24  ;;  %4398 = vmatprep.mubr.msk.f32.mxu1 %vm447_vm0, %v2988_v25 }
 0x564   : > { %4407 = vmatpush3.msra.mxu0 %v3126_v23  ;;  %4399 = vmatmul.mubr.msk.f32.gmra.mxu1 %vm447_vm0, %v2989_v7 }
 0x565   : > { %4423 = vmatprep.subr.mxu1 %v3257_v28  ;;  %4408 = vmatprep.subr.mxu0 %v3125_v10 }
 0x566   : > { %4424 = vmatpush3.msra.mxu1 %v3257_v28  ;;  %4384 = vmatprep.mubr.msk.f32.mxu0 %vm447_vm0, %v2859_v12 }
 0x567   : > { %4409 = vmatpush3.msra.mxu0 %v3125_v10  ;;  %4401 = vmatprep.mubr.msk.f32.mxu1 %vm447_vm0, %v2990_v61 }
 0x568   : > { %4385 = vmatmul.mubr.msk.f32.gmra.mxu0 %vm447_vm0, %v2860_v9  ;;  %4425 = vmatprep.subr.mxu1 %v3256_v39 }
 0x569   : > { %4402 = vmatmul.mubr.msk.f32.gmra.mxu1 %vm447_vm0, %v2991_v36  ;;  %4410 = vmatprep.subr.mxu0 %v3124_v13 }
 0x56a   : > { %4426 = vmatpush3.msra.mxu1 %v3256_v39  ;;  %4411 = vmatpush3.msra.mxu0 %v3124_v13 }
 0x56b   : > { %4412 = vmatprep.mubr.msk.f32.mxu0 %vm447_vm0, %v3117_v50  ;;  %4427 = vmatprep.subr.mxu1 %v3255_v16 }
 0x56c   : > { %4413 = vmatmul.mubr.msk.f32.vlgmr.msra.gmra.mxu0 %vm447_vm0, %v3118_v38  ;;  %4428 = vmatpush3.msra.mxu1 %v3255_v16 }
 0x56d   : > { %4429 = vmatprep.mubr.msk.f32.mxu1 %vm447_vm0, %v3248_v26  ;;  %4438 = vmatprep.subr.mxu0 %v3389_v51 }
 0x56e   : > { %4430 = vmatmul.mubr.msk.f32.vlgmr.msra.gmra.mxu1 %vm447_vm0, %v3249_v41  ;;  %4439 = vmatpush3.msra.mxu0 %v3389_v51 }
 0x56f   : > { %4455 = vmatprep.subr.mxu1 %v3520_v20  ;;  %4415 = vmatprep.mubr.msk.f32.mxu0 %vm447_vm0, %v3119_v42 }
 0x570   : > { %4440 = vmatprep.subr.mxu0 %v3388_v30  ;;  %4456 = vmatpush3.msra.mxu1 %v3520_v20 }
 0x571   : > { %4416 = vmatmul.mubr.msk.f32.gmra.mxu0 %vm447_vm0, %v3120_v35  ;;  %4432 = vmatprep.mubr.msk.f32.mxu1 %vm447_vm0, %v3250_v27 }
 0x572   : > { %4441 = vmatpush3.msra.mxu0 %v3388_v30  ;;  %4433 = vmatmul.mubr.msk.f32.gmra.mxu1 %vm447_vm0, %v3251_v43 }
 0x573   : > { %4457 = vmatprep.subr.mxu1 %v3519_v45  ;;  %4442 = vmatprep.subr.mxu0 %v3387_v31 }
 0x574   : > { %4458 = vmatpush3.msra.mxu1 %v3519_v45  ;;  %4418 = vmatprep.mubr.msk.f32.mxu0 %vm447_vm0, %v3121_v46 }
 0x575   : > { %4443 = vmatpush3.msra.mxu0 %v3387_v31  ;;  %4435 = vmatprep.mubr.msk.f32.mxu1 %vm447_vm0, %v3252_v48 }
 0x576   : > { %4419 = vmatmul.mubr.msk.f32.gmra.mxu0 %vm447_vm0, %v3122_v49  ;;  %4459 = vmatprep.subr.mxu1 %v3518_v32 }
 0x577   : > { %4436 = vmatmul.mubr.msk.f32.gmra.mxu1 %vm447_vm0, %v3253_v54  ;;  %4444 = vmatprep.subr.mxu0 %v3386_v58 }
 0x578   : > { %4460 = vmatpush3.msra.mxu1 %v3518_v32  ;;  %4445 = vmatpush3.msra.mxu0 %v3386_v58 }
 0x579   : > { %4446 = vmatprep.mubr.msk.f32.mxu0 %vm447_vm0, %v3379_v59  ;;  %4461 = vmatprep.subr.mxu1 %v3517_v62 }
 0x57a   : > { %4447 = vmatmul.mubr.msk.f32.vlgmr.msra.gmra.mxu0 %vm447_vm0, %v3380_v63  ;;  %4462 = vmatpush3.msra.mxu1 %v3517_v62 }
 0x57b   : > { %4463 = vmatprep.mubr.msk.f32.mxu1 %vm447_vm0, %v3510_v55  ;;  %4449 = vmatprep.mubr.msk.f32.mxu0 %vm447_vm0, %v3381_v29 }
 0x57c   : > { %4464 = vmatmul.mubr.msk.f32.vlgmr.msra.gmra.mxu1 %vm447_vm0, %v3511_v57  ;;  %4680 = vset.pattern.permute.xlu1 %v4789_v1 }
 0x57d   : > { %4466 = vmatprep.mubr.msk.f32.mxu1 %vm447_vm0, %v3512_v33  ;;  %4679 = vset.pattern.permute.xlu0 %v4789_v1 }
 0x57e   : > { %4450 = vmatmul.mubr.msk.f32.gmra.mxu0 %vm447_vm0, %v3382_v34  ;;  %3671 = vperm.xlu1 %4680, %v3655_v37  }
 0x57f   : > { %4452 = vmatprep.mubr.msk.f32.mxu0 %vm447_vm0, %v3383_v6  ;;  %3661 = vperm.xlu0 %4679, %v3653_v3  }
 0x580   : > { %4467 = vmatmul.mubr.msk.f32.gmra.mxu1 %vm447_vm0, %v3513_v44 }
 0x581   : > { %4469 = vmatprep.mubr.msk.f32.mxu1 %vm447_vm0, %v3514_v4 }
 0x582   : > { %4453 = vmatmul.mubr.msk.f32.gmra.mxu0 %vm447_vm0, %v3384_v5  ;;  %3676 = vperm.xlu1 %4680, %v3656_v40  }
 0x583   : > { %3666 = vperm.xlu0 %4679, %v3654_v60  }
 0x584   : > { %4470 = vmatmul.mubr.msk.f32.gmra.mxu1 %vm447_vm0, %v3515_v8 }
 0x586   : > { %3686 = vperm.xlu1 %4680, %v3658_v11  }
 0x587   : > { %3681 = vperm.xlu0 %4679, %v3657_v14  }
 0x5f9   : > { %v3672_v11 = vpop.permute.xlu1 %3671 }
 0x5fa   : > { %v3662_v44 = vpop.permute.xlu0 %3661 }
 0x612   : > { %v4346_v15 = vpop.f32.mrf.mxu0  ;;  %v4363_v18 = vpop.f32.mrf.mxu1 }
 0x613   : > { %v2831_v16 = vadd.f32 %v4363_v18, %v4346_v15 }
 0x614   : > { %v2712_v53 = vpop.f32.mrf.mxu0  ;;  %v2825_v2 = vpop.f32.mrf.mxu1 }
 0x615   : > { %v2826_v51 = vadd.f32 %v2825_v2, %v2712_v53  ;;  %v4049_v2 = vld [vmem:[%s5486_s9] ss:$0 sm:$0xff] }
 0x616   : > { %v4349_v19 = vpop.f32.mrf.mxu0  ;;  %v4366_v52 = vpop.f32.mrf.mxu1 }
 0x617   : > { %v2841_v42 = vadd.f32 %v4366_v52, %v4349_v19 }
 0x618   : > { %v2722_v21 = vpop.f32.mrf.mxu0  ;;  %v2835_v0 = vpop.f32.mrf.mxu1 }
 0x619   : > { %v2836_v43 = vadd.f32 %v2835_v0, %v2722_v21 }
 0x61a   : > { %v4352_v22 = vpop.f32.mrf.mxu0  ;;  %v4369_v56 = vpop.f32.mrf.mxu1 }
 0x61b   : > { %v2851_v48 = vadd.f32 %v4369_v56, %v4352_v22 }
 0x61c   : > { %v2732_v47 = vpop.f32.mrf.mxu0  ;;  %v2845_v17 = vpop.f32.mrf.mxu1 }
 0x61d   : > { %v2846_v59 = vadd.f32 %v2845_v17, %v2732_v47 }
 0x61e   : > { %v4380_v23 = vpop.f32.mrf.mxu0 }
 0x61f   : > { %v2980_v41 = vadd.f32 %v4380_v23, %v2831_v16 }
 0x620   : > { %v4397_v24 = vpop.f32.mrf.mxu1  ;;  %v2950_v25 = vpop.f32.mrf.mxu0 }
 0x621   : > { %v2979_v30 = vadd.f32 %v2950_v25, %v2826_v51  ;;  %v3111_v45 = vadd.f32 %v4397_v24, %v2980_v41  ;;  %v3667_v24 = vpop.permute.xlu0 %3666 }
 0x622   : > { %v3081_v7 = vpop.f32.mrf.mxu1 }
 0x623   : > { %v4383_v28 = vpop.f32.mrf.mxu0  ;;  %v3110_v32 = vadd.f32 %v3081_v7, %v2979_v30 }
 0x624   : > { %v4400_v10 = vpop.f32.mrf.mxu1  ;;  %v2982_v31 = vadd.f32 %v4383_v28, %v2841_v42 }
 0x625   : > { %v2960_v12 = vpop.f32.mrf.mxu0 }
 0x626   : > { %v3091_v61 = vpop.f32.mrf.mxu1  ;;  %v2981_v54 = vadd.f32 %v2960_v12, %v2836_v43  ;;  %v3113_v55 = vadd.f32 %v4400_v10, %v2982_v31 }
 0x628   : > { %v4386_v9 = vpop.f32.mrf.mxu0  ;;  %v3112_v37 = vadd.f32 %v3091_v61, %v2981_v54  ;;  %v3677_v61 = vpop.permute.xlu1 %3676 }
 0x629   : > { %v4403_v39 = vpop.f32.mrf.mxu1  ;;  %v2984_v62 = vadd.f32 %v4386_v9, %v2851_v48 }
 0x62a   : > { %v2970_v36 = vpop.f32.mrf.mxu0 }
 0x62b   : > { %v3101_v13 = vpop.f32.mrf.mxu1  ;;  %v2983_v33 = vadd.f32 %v2970_v36, %v2846_v59  ;;  %v3115_v4 = vadd.f32 %v4403_v39, %v2984_v62 }
 0x62c   : > { %v4414_v50 = vpop.f32.mrf.mxu0 }
 0x62d   : > { %v3242_v58 = vadd.f32 %v4414_v50, %v3111_v45  ;;  %v3114_v14 = vadd.f32 %v3101_v13, %v2983_v33 }
 0x62e   : > { %v4431_v38 = vpop.f32.mrf.mxu1  ;;  %v3212_v26 = vpop.f32.mrf.mxu0 }
 0x62f   : > { %v3241_v29 = vadd.f32 %v3212_v26, %v3110_v32  ;;  %v3373_v6 = vadd.f32 %v4431_v38, %v3242_v58  ;;  %v3682_v58 = vpop.permute.xlu0 %3681 }
 0x630   : > { %v3343_v20 = vpop.f32.mrf.mxu1 }
 0x631   : > { %v4417_v35 = vpop.f32.mrf.mxu0  ;;  %v3372_v40 = vadd.f32 %v3343_v20, %v3241_v29 }
 0x632   : > { %v4434_v27 = vpop.f32.mrf.mxu1  ;;  %v3244_v1 = vadd.f32 %v4417_v35, %v3113_v55 }
 0x633   : > { %v3222_v46 = vpop.f32.mrf.mxu0 }
 0x634   : > { %v3353_v49 = vpop.f32.mrf.mxu1  ;;  %v3243_v60 = vadd.f32 %v3222_v46, %v3112_v37  ;;  %v3375_v19 = vadd.f32 %v4434_v27, %v3244_v1 }
 0x636   : > { %v4420_v63 = vpop.f32.mrf.mxu0  ;;  %v3374_v47 = vadd.f32 %v3353_v49, %v3243_v60  ;;  %v3687_v49 = vpop.permute.xlu1 %3686 }
 0x637   : > { %v4437_v57 = vpop.f32.mrf.mxu1  ;;  %v3246_v15 = vadd.f32 %v4420_v63, %v3115_v4 }
 0x638   : > { %v3232_v34 = vpop.f32.mrf.mxu0 }
 0x639   : > { %v3363_v3 = vpop.f32.mrf.mxu1  ;;  %v3245_v0 = vadd.f32 %v3232_v34, %v3114_v14  ;;  %v3377_v7 = vadd.f32 %v4437_v57, %v3246_v15 }
 0x63a   : > { %v4448_v5 = vpop.f32.mrf.mxu0 }
 0x63b   : > { %v3504_v8 = vadd.f32 %v4448_v5, %v3373_v6  ;;  %v3376_v13 = vadd.f32 %v3363_v3, %v3245_v0 }
 0x63c   : > { %v4465_v18 = vpop.f32.mrf.mxu1  ;;  %v3474_v53 = vpop.f32.mrf.mxu0 }
 0x63d   : > { %v3635_v52 = vadd.f32 %v4465_v18, %v3504_v8  ;;  %v3503_v21 = vadd.f32 %v3474_v53, %v3372_v40 }
 0x63e   : > { %v3605_v22 = vpop.f32.mrf.mxu1  ;;  %v4451_v56 = vpop.f32.mrf.mxu0 }
 0x63f   : > { %v3634_v17 = vadd.f32 %v3605_v22, %v3503_v21  ;;  %v3506_v23 = vadd.f32 %v4451_v56, %v3375_v19  ;;  %v3648_v25 = vadd.f32 %v4049_v2, %v3635_v52 }
 0x640   : > { %v4468_v28 = vpop.f32.mrf.mxu1  ;;  %v3484_v10 = vpop.f32.mrf.mxu0 }
 0x641   : > { %v3647_v12 = vadd.f32 %v4049_v2, %v3634_v17  ;;  %v3690_v9 = vmul.f32 %v3667_v24, %v3648_v25  ;;  %v3637_v39 = vadd.f32 %v4468_v28, %v3506_v23  ;;  %v3505_v36 = vadd.f32 %v3484_v10, %v3374_v47 }
 0x642   : > { %v3615_v50 = vpop.f32.mrf.mxu1  ;;  %v4454_v16 = vpop.f32.mrf.mxu0 }
 0x643   : > { %v3689_v38 = vmul.f32 %v3662_v44, %v3647_v12  ;;  %3696 = vst.msk [vmem:[%s4933_s30 + $0x8] sm:$0xff] %vm447_vm0, %v3690_v9  ;;  %v3650_v26 = vadd.f32 %v4049_v2, %v3637_v39  ;;  %v3636_v51 = vadd.f32 %v3615_v50, %v3505_v36  ;;  %v3508_v41 = vadd.f32 %v4454_v16, %v3377_v7 }
 0x644   : > { %v4471_v20 = vpop.f32.mrf.mxu1  ;;  %v3494_v42 = vpop.f32.mrf.mxu0 }
 0x645   : > { %3695 = vst.msk [vmem:[%s4933_s30] sm:$0xff] %vm447_vm0, %v3689_v38  ;;  %v3692_v30 = vmul.f32 %v3677_v61, %v3650_v26  ;;  %v3649_v35 = vadd.f32 %v4049_v2, %v3636_v51  ;;  %v3639_v27 = vadd.f32 %v4471_v20, %v3508_v41  ;;  %v3507_v43 = vadd.f32 %v3494_v42, %v3376_v13 }
 0x646   : > { %v3625_v45 = vpop.f32.mrf.mxu1 }
 0x647   : > { %3698 = vst.msk [vmem:[%s4933_s30 + $0x18] sm:$0xff] %vm447_vm0, %v3692_v30  ;;  %v3691_v31 = vmul.f32 %v3672_v11, %v3649_v35  ;;  %v3652_v46 = vadd.f32 %v4049_v2, %v3639_v27  ;;  %v3638_v48 = vadd.f32 %v3625_v45, %v3507_v43 }
 0x649   : > { %3697 = vst.msk [vmem:[%s4933_s30 + $0x10] sm:$0xff] %vm447_vm0, %v3691_v31  ;;  %v3694_v32 = vmul.f32 %v3687_v49, %v3652_v46  ;;  %v3651_v54 = vadd.f32 %v4049_v2, %v3638_v48 }
 0x64b   : > { %3700 = vst.msk [vmem:[%s4933_s30 + $0x28] sm:$0xff] %vm447_vm0, %v3694_v32  ;;  %v3693_v59 = vmul.f32 %v3682_v58, %v3651_v54 }
 0x64d   : > { %3699 = vst.msk [vmem:[%s4933_s30 + $0x20] sm:$0xff] %vm447_vm0, %v3693_v59 }
 0x64e PF: > { %s23_s13 = sadd.s32 1, %s4774_s13  }
 0x64f   : > { %p20_p3 = scmp.ge.s32.totalorder %s23_s13, 4  }
 0x651   :  { %22 = sbr.rel (!%p20_p3) target bundleno = 3 (0x3), region = 176 }
 0x656   :  { %3722 = vsyncpa [#allocation7], 1 }
 0x657   :  { %3724 = vsyncpa [#allocation7 + $0x1], 1 }
 0x658   :  { %3725 = vsyncpa [#allocation11], 1 }
 0x659   :  { %3726 = vsyncpa [#allocation8], 1 }
 0x65a   :  { %3728 = vsyncpa [#allocation8 + $0x1], 1 }

</bundles_post_ra>
